<compile_context>
chip_gen: v5e
topology: v5e:2x2
jax: 0.10.0
libtpu: 0.0.40
codegen_flags: <defaults>
</compile_context>

<pallas_src>
import math
import functools

import jax
import jax.numpy as jnp
from jax.experimental import pallas as pl
from jax.experimental.pallas import tpu as pltpu


# ----------------------------------------------------------------------------- helpers
def _layer_norm(x, g, b, eps=1e-5):
    mu = jnp.mean(x, axis=-1, keepdims=True)
    xc = x - mu
    var = jnp.mean(xc * xc, axis=-1, keepdims=True)
    return xc * jax.lax.rsqrt(var + eps) * g + b


# ----------------------------------------------------------------------------- kernel
def _model_kernel(tok_ref,
                  w_emb_ref, b_emb_ref,
                  wqkv_ref, bqkv_ref, wo_ref, bo_ref,
                  ln1g_ref, ln1b_ref, w1_ref, b1_ref, w2_ref, b2_ref,
                  ln2g_ref, ln2b_ref, lng_ref, lnb_ref, wp_ref, bp_ref,
                  out_ref, *, n_heads, n_enc, e_layers):
    f32 = jnp.float32
    bf16 = jnp.bfloat16

    toks = tok_ref[0]                                    # [T, L] f32, variates-as-tokens
    T = toks.shape[0]

    # ---- instance norm over time (biased var, eps inside sqrt).  Only the first
    # n_enc rows are real variates; time-mark rows pass through un-normalized. ----
    mean = jnp.mean(toks, axis=-1, keepdims=True)        # [T, 1]
    xc = toks - mean
    var = jnp.mean(xc * xc, axis=-1, keepdims=True)
    stdev = jnp.sqrt(var + 1e-5)
    row = jax.lax.broadcasted_iota(jnp.int32, (T, 1), 0)
    is_enc = row < n_enc
    toks_n = jnp.where(is_enc, xc / stdev, toks)

    # TODO(synk): Momentum module skipped ('momentum' in TRAIN_COMPONENTS_TO_DISABLE).

    # ---- DataEmbedding_inverted (bf16 inputs, f32 accumulation) ----
    h = jnp.dot(toks_n.astype(bf16), w_emb_ref[...],
                preferred_element_type=f32) + b_emb_ref[...]                 # [T, D]

    D = h.shape[-1]
    H = n_heads
    dh = D // H
    scale = 1.0 / math.sqrt(dh)

    # ---- encoder layers (statically unrolled; weights stacked over layers) ----
    for l in range(e_layers):
        # fused QKV projection: one [T, D] x [D, 3D] matmul
        qkv = jnp.dot(h.astype(bf16), wqkv_ref[l],
                      preferred_element_type=f32) + bqkv_ref[l]              # [T, 3D]
        qkv_b = qkv.astype(bf16)
        # head-major [3H, T, dh] via outer-axis stack (no lane concat downstream)
        qkv_h = jnp.stack([qkv_b[:, c * dh:(c + 1) * dh] for c in range(3 * H)], axis=0)
        q = qkv_h[:H]                                                        # [H, T, dh]
        k = qkv_h[H:2 * H]
        v = qkv_h[2 * H:]

        # head-batched attention scores: [H, T, dh] x [H, T, dh] -> [H, T, T]
        s = jax.lax.dot_general(q, k, (((2,), (2,)), ((0,), (0,))),
                                preferred_element_type=f32) * scale
        s = s - jnp.max(s, axis=-1, keepdims=True)
        p = jnp.exp(s)
        p = p * pl.reciprocal(jnp.sum(p, axis=-1, keepdims=True), approx=True)

        # [H, T, T] x [H, T, dh] -> [H, T, dh]
        o = jax.lax.dot_general(p.astype(bf16), v, (((2,), (1,)), ((0,), (0,))),
                                preferred_element_type=f32)
        # out-projection distributed over heads: [H,T,dh] x [H,dh,D] -> sum_H -> [T,D]
        attn = jax.lax.dot_general(o.astype(bf16), wo_ref[l],
                                   (((2,), (1,)), ((0,), (0,))),
                                   preferred_element_type=f32)               # [H, T, D]
        attn = jnp.sum(attn, axis=0) + bo_ref[l]

        x1 = _layer_norm(h + attn, ln1g_ref[l], ln1b_ref[l])
        y = jnp.dot(x1.astype(bf16), w1_ref[l], preferred_element_type=f32) + b1_ref[l]
        y = jnp.maximum(y, 0.0)                                              # 'relu'
        y = jnp.dot(y.astype(bf16), w2_ref[l], preferred_element_type=f32) + b2_ref[l]
        h = _layer_norm(x1 + y, ln2g_ref[l], ln2b_ref[l])

    # ---- final encoder LayerNorm + projection d_model -> pred_len ----
    h = _layer_norm(h, lng_ref[...], lnb_ref[...])
    proj = jnp.dot(h.astype(bf16), wp_ref[...],
                   preferred_element_type=f32) + bp_ref[...]                 # [T, P]
    # de-normalize per token row (mark rows are discarded by the wrapper)
    out_ref[0] = (proj * stdev + mean).astype(out_ref.dtype)


# ----------------------------------------------------------------------------- wrapper
_WEIGHT_NAMES = ['w_emb', 'b_emb', 'wqkv', 'bqkv', 'wo', 'bo',
                 'ln1g', 'ln1b', 'w1', 'b1', 'w2', 'b2', 'ln2g', 'ln2b',
                 'lng', 'lnb', 'wp', 'bp']


def _prep_weights(params, *, n_heads):
    E, D, _ = params['wq'].shape
    dh = D // n_heads
    bf = lambda a: a.astype(jnp.bfloat16)
    return {
        'w_emb': bf(params['w_emb']), 'b_emb': params['b_emb'],
        # fused QKV weight [E, D, 3D]; columns ordered [q | k | v], heads-major inside
        'wqkv': bf(jnp.concatenate([params['wq'], params['wk'], params['wv']], axis=-1)),
        'bqkv': jnp.concatenate([params['bq'], params['bk'], params['bv']], axis=-1),
        # out-projection split per head: [E, H, dh, D]
        'wo': bf(params['wo'].reshape(E, n_heads, dh, D)), 'bo': params['bo'],
        'ln1g': params['ln1g'], 'ln1b': params['ln1b'],
        'w1': bf(params['w1']), 'b1': params['b1'],
        'w2': bf(params['w2']), 'b2': params['b2'],
        'ln2g': params['ln2g'], 'ln2b': params['ln2b'],
        'lng': params['lng'], 'lnb': params['lnb'],
        'wp': bf(params['wp']), 'bp': params['bp'],
    }


def itransformer_momentum1_forward(x_enc, x_mark_enc, params, *, n_heads, pred_len, e_layers):
    B, L, N = x_enc.shape
    M = x_mark_enc.shape[-1]
    T = N + M
    D = params['w_emb'].shape[-1]
    assert D % n_heads == 0, "d_model must be divisible by n_heads"

    # layout plumbing stays on the XLA side: variates-as-tokens [B, T, L]
    tokens = jnp.concatenate([jnp.swapaxes(x_enc, 1, 2),
                              jnp.swapaxes(x_mark_enc, 1, 2)], axis=1).astype(jnp.float32)

    w = _prep_weights(params, n_heads=n_heads)
    weights = [w[n] for n in _WEIGHT_NAMES]

    def bcast_spec(arr):
        nd = arr.ndim
        return pl.BlockSpec(arr.shape, lambda b, _nd=nd: (0,) * _nd)

    kernel = functools.partial(_model_kernel, n_heads=n_heads, n_enc=N, e_layers=e_layers)

    out = pl.pallas_call(
        kernel,
        out_shape=jax.ShapeDtypeStruct((B, T, pred_len), jnp.float32),
        grid=(B,),
        in_specs=[pl.BlockSpec((1, T, L), lambda b: (b, 0, 0))]
                 + [bcast_spec(a) for a in weights],
        out_specs=pl.BlockSpec((1, T, pred_len), lambda b: (b, 0, 0)),
        compiler_params=pltpu.CompilerParams(dimension_semantics=("parallel",)),
    )(tokens, *weights)                                                      # [B, T, P]

    # drop time-mark tokens and move to [B, pred_len, N] (free XLA transpose)
    return jnp.swapaxes(out[:, :N, :], 1, 2)


# ----------------------------------------------------------------------------- params
def init_params(key, *, seq_len, d_model, d_ff, pred_len, e_layers):
    ks = jax.random.split(key, 16)

    def nrm(k, shape, s=0.05):
        return (jax.random.normal(k, shape, dtype=jnp.float32) * s).astype(jnp.float32)

    E, D, F = e_layers, d_model, d_ff
    return {
        'w_emb': nrm(ks[0], (seq_len, D)),
        'b_emb': nrm(ks[1], (1, D)),
        'wq': nrm(ks[2], (E, D, D)), 'bq': nrm(ks[3], (E, 1, D)),
        'wk': nrm(ks[4], (E, D, D)), 'bk': nrm(ks[5], (E, 1, D)),
        'wv': nrm(ks[6], (E, D, D)), 'bv': nrm(ks[7], (E, 1, D)),
        'wo': nrm(ks[8], (E, D, D)), 'bo': nrm(ks[9], (E, 1, D)),
        'ln1g': jnp.ones((E, 1, D), jnp.float32), 'ln1b': jnp.zeros((E, 1, D), jnp.float32),
        'w1': nrm(ks[10], (E, D, F)), 'b1': nrm(ks[11], (E, 1, F)),
        'w2': nrm(ks[12], (E, F, D)), 'b2': nrm(ks[13], (E, 1, D)),
        'ln2g': jnp.ones((E, 1, D), jnp.float32), 'ln2b': jnp.zeros((E, 1, D), jnp.float32),
        'lng': jnp.ones((1, D), jnp.float32), 'lnb': jnp.zeros((1, D), jnp.float32),
        'wp': nrm(ks[14], (D, pred_len)), 'bp': nrm(ks[15], (1, pred_len)),
    }


# ----------------------------------------------------------------------------- pure-JAX reference
def reference_forward(x_enc, x_mark_enc, params, *, n_heads, pred_len, e_layers):
    B, L, N = x_enc.shape
    means = jnp.mean(x_enc, axis=1, keepdims=True)
    xc = x_enc - means
    stdev = jnp.sqrt(jnp.mean(xc * xc, axis=1, keepdims=True) + 1e-5)
    xn = xc / stdev

    tokens = jnp.concatenate([jnp.swapaxes(xn, 1, 2), jnp.swapaxes(x_mark_enc, 1, 2)], axis=1)
    h = tokens @ params['w_emb'] + params['b_emb']
    D = h.shape[-1]
    dh = D // n_heads
    scale = 1.0 / math.sqrt(dh)

    def ln(x, g, b):
        mu = jnp.mean(x, axis=-1, keepdims=True)
        v = jnp.mean((x - mu) ** 2, axis=-1, keepdims=True)
        return (x - mu) * jax.lax.rsqrt(v + 1e-5) * g + b

    T = h.shape[1]
    for l in range(e_layers):
        q = (h @ params['wq'][l] + params['bq'][l]).reshape(B, T, n_heads, dh)
        k = (h @ params['wk'][l] + params['bk'][l]).reshape(B, T, n_heads, dh)
        v = (h @ params['wv'][l] + params['bv'][l]).reshape(B, T, n_heads, dh)
        sc = jnp.einsum('bthd,bshd->bhts', q, k) * scale
        p = jax.nn.softmax(sc, axis=-1)
        a = jnp.einsum('bhts,bshd->bthd', p, v).reshape(B, T, D)
        a = a @ params['wo'][l] + params['bo'][l]
        x1 = ln(h + a, params['ln1g'][l], params['ln1b'][l])
        y = jnp.maximum(x1 @ params['w1'][l] + params['b1'][l], 0.0)
        y = y @ params['w2'][l] + params['b2'][l]
        h = ln(x1 + y, params['ln2g'][l], params['ln2b'][l])

    h = ln(h, params['lng'], params['lnb'])
    proj = h @ params['wp'] + params['bp']                       # [B, T, P]
    dec = jnp.swapaxes(proj, 1, 2)[:, :, :N]                     # [B, P, N]
    dec = dec * stdev + means
    return dec[:, -pred_len:, :]


# ----------------------------------------------------------------------------- main
if __name__ == "__main__":
    B, L, N, M = 2, 16, 12, 4          # batch, seq_len, enc_in, time-mark channels
    d_model, n_heads, d_ff, e_layers, pred_len = 32, 4, 64, 2, 8

    key = jax.random.PRNGKey(0)
    kx, km, kp = jax.random.split(key, 3)
    x_enc = jax.random.normal(kx, (B, L, N), dtype=jnp.float32)
    x_mark_enc = jax.random.normal(km, (B, L, M), dtype=jnp.float32)

    params = init_params(kp, seq_len=L, d_model=d_model, d_ff=d_ff,
                         pred_len=pred_len, e_layers=e_layers)

    out = itransformer_momentum1_forward(x_enc, x_mark_enc, params,
                                         n_heads=n_heads, pred_len=pred_len,
                                         e_layers=e_layers)
    out = jax.block_until_ready(out)

    ref = jax.block_until_ready(
        reference_forward(x_enc, x_mark_enc, params,
                          n_heads=n_heads, pred_len=pred_len, e_layers=e_layers))

    assert out.shape == (B, pred_len, N), out.shape
    max_err = float(jnp.max(jnp.abs(out - ref)))
    assert jnp.isfinite(out).all(), "non-finite output"
    assert max_err < 5e-2, f"mismatch vs pure-JAX reference: {max_err}"
    print("KERNEL_OK")
</pallas_src>

<mosaic_0001>
module attributes {stable_mosaic.version = 11 : i64} {
  func.func @_model_kernel(%arg0: i32, %arg1: memref<1x16x16xf32, #tpu.memory_space<vmem>>, %arg2: memref<16x32xbf16, #tpu.memory_space<vmem>>, %arg3: memref<1x32xf32, #tpu.memory_space<vmem>>, %arg4: memref<2x32x96xbf16, #tpu.memory_space<vmem>>, %arg5: memref<2x1x96xf32, #tpu.memory_space<vmem>>, %arg6: memref<2x4x8x32xbf16, #tpu.memory_space<vmem>>, %arg7: memref<2x1x32xf32, #tpu.memory_space<vmem>>, %arg8: memref<2x1x32xf32, #tpu.memory_space<vmem>>, %arg9: memref<2x1x32xf32, #tpu.memory_space<vmem>>, %arg10: memref<2x32x64xbf16, #tpu.memory_space<vmem>>, %arg11: memref<2x1x64xf32, #tpu.memory_space<vmem>>, %arg12: memref<2x64x32xbf16, #tpu.memory_space<vmem>>, %arg13: memref<2x1x32xf32, #tpu.memory_space<vmem>>, %arg14: memref<2x1x32xf32, #tpu.memory_space<vmem>>, %arg15: memref<2x1x32xf32, #tpu.memory_space<vmem>>, %arg16: memref<1x32xf32, #tpu.memory_space<vmem>>, %arg17: memref<1x32xf32, #tpu.memory_space<vmem>>, %arg18: memref<32x8xbf16, #tpu.memory_space<vmem>>, %arg19: memref<1x8xf32, #tpu.memory_space<vmem>>, %arg20: memref<1x16x8xf32, #tpu.memory_space<vmem>>) attributes {dimension_semantics = [#tpu.dimension_semantics<parallel>], iteration_bounds = array<i64: 2>, scalar_prefetch = 0 : i64, scratch_operands = 0 : i64, tpu.core_type = #tpu.core_type<tc>, window_params = [{transform_indices = @transform_0, window_bounds = array<i64: 1, 16, 16>}, {pipeline_mode = #tpu.pipeline_mode<synchronous>, transform_indices = @transform_1, window_bounds = array<i64: 16, 32>}, {pipeline_mode = #tpu.pipeline_mode<synchronous>, transform_indices = @transform_2, window_bounds = array<i64: 1, 32>}, {pipeline_mode = #tpu.pipeline_mode<synchronous>, transform_indices = @transform_3, window_bounds = array<i64: 2, 32, 96>}, {pipeline_mode = #tpu.pipeline_mode<synchronous>, transform_indices = @transform_4, window_bounds = array<i64: 2, 1, 96>}, {pipeline_mode = #tpu.pipeline_mode<synchronous>, transform_indices = @transform_5, window_bounds = array<i64: 2, 4, 8, 32>}, {pipeline_mode = #tpu.pipeline_mode<synchronous>, transform_indices = @transform_6, window_bounds = array<i64: 2, 1, 32>}, {pipeline_mode = #tpu.pipeline_mode<synchronous>, transform_indices = @transform_7, window_bounds = array<i64: 2, 1, 32>}, {pipeline_mode = #tpu.pipeline_mode<synchronous>, transform_indices = @transform_8, window_bounds = array<i64: 2, 1, 32>}, {pipeline_mode = #tpu.pipeline_mode<synchronous>, transform_indices = @transform_9, window_bounds = array<i64: 2, 32, 64>}, {pipeline_mode = #tpu.pipeline_mode<synchronous>, transform_indices = @transform_10, window_bounds = array<i64: 2, 1, 64>}, {pipeline_mode = #tpu.pipeline_mode<synchronous>, transform_indices = @transform_11, window_bounds = array<i64: 2, 64, 32>}, {pipeline_mode = #tpu.pipeline_mode<synchronous>, transform_indices = @transform_12, window_bounds = array<i64: 2, 1, 32>}, {pipeline_mode = #tpu.pipeline_mode<synchronous>, transform_indices = @transform_13, window_bounds = array<i64: 2, 1, 32>}, {pipeline_mode = #tpu.pipeline_mode<synchronous>, transform_indices = @transform_14, window_bounds = array<i64: 2, 1, 32>}, {pipeline_mode = #tpu.pipeline_mode<synchronous>, transform_indices = @transform_15, window_bounds = array<i64: 1, 32>}, {pipeline_mode = #tpu.pipeline_mode<synchronous>, transform_indices = @transform_16, window_bounds = array<i64: 1, 32>}, {pipeline_mode = #tpu.pipeline_mode<synchronous>, transform_indices = @transform_17, window_bounds = array<i64: 32, 8>}, {pipeline_mode = #tpu.pipeline_mode<synchronous>, transform_indices = @transform_18, window_bounds = array<i64: 1, 8>}, {transform_indices = @transform_19, window_bounds = array<i64: 1, 16, 8>}]} {
    %c0 = arith.constant 0 : index
    %c0_0 = arith.constant 0 : index
    %c0_1 = arith.constant 0 : index
    %0 = vector.load %arg1[%c0, %c0_0, %c0_1] : memref<1x16x16xf32, #tpu.memory_space<vmem>>, vector<1x16x16xf32>
    %1 = vector.shape_cast %0 : vector<1x16x16xf32> to vector<16x16xf32>
    %cst = arith.constant dense<0.000000e+00> : vector<16xf32>
    %2 = vector.multi_reduction <add>, %1, %cst [1] : vector<16x16xf32> to vector<16xf32>
    %3 = vector.shape_cast %2 : vector<16xf32> to vector<16x1xf32>
    %cst_2 = arith.constant 1.600000e+01 : f32
    %4 = vector.broadcast %cst_2 : f32 to vector<16x1xf32>
    %5 = arith.divf %3, %4 : vector<16x1xf32>
    %6 = vector.broadcast %5 : vector<16x1xf32> to vector<16x16xf32>
    %7 = arith.subf %1, %6 : vector<16x16xf32>
    %8 = arith.mulf %7, %7 : vector<16x16xf32>
    %cst_3 = arith.constant dense<0.000000e+00> : vector<16xf32>
    %9 = vector.multi_reduction <add>, %8, %cst_3 [1] : vector<16x16xf32> to vector<16xf32>
    %10 = vector.shape_cast %9 : vector<16xf32> to vector<16x1xf32>
    %cst_4 = arith.constant 1.600000e+01 : f32
    %11 = vector.broadcast %cst_4 : f32 to vector<16x1xf32>
    %12 = arith.divf %10, %11 : vector<16x1xf32>
    %cst_5 = arith.constant 9.99999974E-6 : f32
    %13 = vector.broadcast %cst_5 : f32 to vector<16x1xf32>
    %14 = arith.addf %12, %13 : vector<16x1xf32>
    %15 = math.sqrt %14 : vector<16x1xf32>
    %16 = tpu.iota {dimensions = array<i32: 0>} : vector<16x1xi32>
    %c12_i32 = arith.constant 12 : i32
    %17 = vector.broadcast %c12_i32 : i32 to vector<16x1xi32>
    %18 = arith.cmpi slt, %16, %17 : vector<16x1xi32>
    %19 = vector.broadcast %15 : vector<16x1xf32> to vector<16x16xf32>
    %20 = arith.divf %7, %19 : vector<16x16xf32>
    %21 = vector.shape_cast %18 : vector<16x1xi1> to vector<16x1xi1>
    %22 = vector.broadcast %21 : vector<16x1xi1> to vector<16x16xi1>
    %23 = arith.select %22, %20, %1 : vector<16x16xi1>, vector<16x16xf32>
    %24 = arith.truncf %23 : vector<16x16xf32> to vector<16x16xbf16>
    %c0_6 = arith.constant 0 : index
    %c0_7 = arith.constant 0 : index
    %25 = vector.load %arg2[%c0_6, %c0_7] : memref<16x32xbf16, #tpu.memory_space<vmem>>, vector<16x32xbf16>
    %cst_8 = arith.constant dense<0.000000e+00> : vector<16x32xf32>
    %26 = tpu.matmul %24, %25, %cst_8 {dimension_numbers = #tpu.dot_dimension_numbers<[1], [0], [0], [1], [0, 0, 1, 1], [], []>} : vector<16x16xbf16>, vector<16x32xbf16>, vector<16x32xf32> -> vector<16x32xf32>
    %c0_9 = arith.constant 0 : index
    %c0_10 = arith.constant 0 : index
    %27 = vector.load %arg3[%c0_9, %c0_10] : memref<1x32xf32, #tpu.memory_space<vmem>>, vector<1x32xf32>
    %28 = vector.broadcast %27 : vector<1x32xf32> to vector<16x32xf32>
    %29 = arith.addf %26, %28 : vector<16x32xf32>
    %30 = arith.truncf %29 : vector<16x32xf32> to vector<16x32xbf16>
    %c0_11 = arith.constant 0 : index
    %c0_12 = arith.constant 0 : index
    %c0_13 = arith.constant 0 : index
    %31 = vector.load %arg4[%c0_11, %c0_12, %c0_13] : memref<2x32x96xbf16, #tpu.memory_space<vmem>>, vector<1x32x96xbf16>
    %32 = vector.shape_cast %31 : vector<1x32x96xbf16> to vector<32x96xbf16>
    %cst_14 = arith.constant dense<0.000000e+00> : vector<16x96xf32>
    %33 = tpu.matmul %30, %32, %cst_14 {dimension_numbers = #tpu.dot_dimension_numbers<[1], [0], [0], [1], [0, 0, 1, 1], [], []>} : vector<16x32xbf16>, vector<32x96xbf16>, vector<16x96xf32> -> vector<16x96xf32>
    %c0_15 = arith.constant 0 : index
    %c0_16 = arith.constant 0 : index
    %c0_17 = arith.constant 0 : index
    %34 = vector.load %arg5[%c0_15, %c0_16, %c0_17] : memref<2x1x96xf32, #tpu.memory_space<vmem>>, vector<1x1x96xf32>
    %35 = vector.shape_cast %34 : vector<1x1x96xf32> to vector<1x96xf32>
    %36 = vector.broadcast %35 : vector<1x96xf32> to vector<16x96xf32>
    %37 = arith.addf %33, %36 : vector<16x96xf32>
    %38 = arith.truncf %37 : vector<16x96xf32> to vector<16x96xbf16>
    %39 = vector.extract_strided_slice %38 {offsets = [0, 0], sizes = [16, 8], strides = [1, 1]} : vector<16x96xbf16> to vector<16x8xbf16>
    %40 = vector.extract_strided_slice %38 {offsets = [0, 8], sizes = [16, 8], strides = [1, 1]} : vector<16x96xbf16> to vector<16x8xbf16>
    %41 = vector.extract_strided_slice %38 {offsets = [0, 16], sizes = [16, 8], strides = [1, 1]} : vector<16x96xbf16> to vector<16x8xbf16>
    %42 = vector.extract_strided_slice %38 {offsets = [0, 24], sizes = [16, 8], strides = [1, 1]} : vector<16x96xbf16> to vector<16x8xbf16>
    %43 = vector.extract_strided_slice %38 {offsets = [0, 32], sizes = [16, 8], strides = [1, 1]} : vector<16x96xbf16> to vector<16x8xbf16>
    %44 = vector.extract_strided_slice %38 {offsets = [0, 40], sizes = [16, 8], strides = [1, 1]} : vector<16x96xbf16> to vector<16x8xbf16>
    %45 = vector.extract_strided_slice %38 {offsets = [0, 48], sizes = [16, 8], strides = [1, 1]} : vector<16x96xbf16> to vector<16x8xbf16>
    %46 = vector.extract_strided_slice %38 {offsets = [0, 56], sizes = [16, 8], strides = [1, 1]} : vector<16x96xbf16> to vector<16x8xbf16>
    %47 = vector.extract_strided_slice %38 {offsets = [0, 64], sizes = [16, 8], strides = [1, 1]} : vector<16x96xbf16> to vector<16x8xbf16>
    %48 = vector.extract_strided_slice %38 {offsets = [0, 72], sizes = [16, 8], strides = [1, 1]} : vector<16x96xbf16> to vector<16x8xbf16>
    %49 = vector.extract_strided_slice %38 {offsets = [0, 80], sizes = [16, 8], strides = [1, 1]} : vector<16x96xbf16> to vector<16x8xbf16>
    %50 = vector.extract_strided_slice %38 {offsets = [0, 88], sizes = [16, 8], strides = [1, 1]} : vector<16x96xbf16> to vector<16x8xbf16>
    %51 = vector.shape_cast %39 : vector<16x8xbf16> to vector<1x16x8xbf16>
    %52 = vector.shape_cast %40 : vector<16x8xbf16> to vector<1x16x8xbf16>
    %53 = vector.shape_cast %41 : vector<16x8xbf16> to vector<1x16x8xbf16>
    %54 = vector.shape_cast %42 : vector<16x8xbf16> to vector<1x16x8xbf16>
    %55 = vector.shape_cast %43 : vector<16x8xbf16> to vector<1x16x8xbf16>
    %56 = vector.shape_cast %44 : vector<16x8xbf16> to vector<1x16x8xbf16>
    %57 = vector.shape_cast %45 : vector<16x8xbf16> to vector<1x16x8xbf16>
    %58 = vector.shape_cast %46 : vector<16x8xbf16> to vector<1x16x8xbf16>
    %59 = vector.shape_cast %47 : vector<16x8xbf16> to vector<1x16x8xbf16>
    %60 = vector.shape_cast %48 : vector<16x8xbf16> to vector<1x16x8xbf16>
    %61 = vector.shape_cast %49 : vector<16x8xbf16> to vector<1x16x8xbf16>
    %62 = vector.shape_cast %50 : vector<16x8xbf16> to vector<1x16x8xbf16>
    %63 = tpu.concatenate %51, %52, %53, %54, %55, %56, %57, %58, %59, %60, %61, %62 in 0 : vector<1x16x8xbf16>, vector<1x16x8xbf16>, vector<1x16x8xbf16>, vector<1x16x8xbf16>, vector<1x16x8xbf16>, vector<1x16x8xbf16>, vector<1x16x8xbf16>, vector<1x16x8xbf16>, vector<1x16x8xbf16>, vector<1x16x8xbf16>, vector<1x16x8xbf16>, vector<1x16x8xbf16> -> vector<12x16x8xbf16>
    %64 = vector.extract_strided_slice %63 {offsets = [0, 0, 0], sizes = [4, 16, 8], strides = [1, 1, 1]} : vector<12x16x8xbf16> to vector<4x16x8xbf16>
    %65 = vector.extract_strided_slice %63 {offsets = [4, 0, 0], sizes = [4, 16, 8], strides = [1, 1, 1]} : vector<12x16x8xbf16> to vector<4x16x8xbf16>
    %66 = vector.extract_strided_slice %63 {offsets = [8, 0, 0], sizes = [4, 16, 8], strides = [1, 1, 1]} : vector<12x16x8xbf16> to vector<4x16x8xbf16>
    %cst_18 = arith.constant dense<0.000000e+00> : vector<4x16x16xf32>
    %67 = tpu.matmul %64, %65, %cst_18 {dimension_numbers = #tpu.dot_dimension_numbers<[2], [2], [1], [1], [0, 0, 0, 1, 1, 1], [0], [0]>} : vector<4x16x8xbf16>, vector<4x16x8xbf16>, vector<4x16x16xf32> -> vector<4x16x16xf32>
    %cst_19 = arith.constant 0.353553385 : f32
    %68 = vector.broadcast %cst_19 : f32 to vector<4x16x16xf32>
    %69 = arith.mulf %67, %68 : vector<4x16x16xf32>
    %cst_20 = arith.constant dense<0xFF800000> : vector<4x16xf32>
    %70 = vector.multi_reduction <maximumf>, %69, %cst_20 [2] : vector<4x16x16xf32> to vector<4x16xf32>
    %71 = vector.shape_cast %70 : vector<4x16xf32> to vector<4x16x1xf32>
    %72 = vector.broadcast %71 : vector<4x16x1xf32> to vector<4x16x16xf32>
    %73 = arith.subf %69, %72 : vector<4x16x16xf32>
    %74 = math.exp %73 : vector<4x16x16xf32>
    %cst_21 = arith.constant dense<0.000000e+00> : vector<4x16xf32>
    %75 = vector.multi_reduction <add>, %74, %cst_21 [2] : vector<4x16x16xf32> to vector<4x16xf32>
    %76 = vector.shape_cast %75 : vector<4x16xf32> to vector<4x16x1xf32>
    %77 = tpu.reciprocal %76 {approx = true} : vector<4x16x1xf32> -> vector<4x16x1xf32>
    %78 = vector.broadcast %77 : vector<4x16x1xf32> to vector<4x16x16xf32>
    %79 = arith.mulf %74, %78 : vector<4x16x16xf32>
    %80 = arith.truncf %79 : vector<4x16x16xf32> to vector<4x16x16xbf16>
    %cst_22 = arith.constant dense<0.000000e+00> : vector<4x16x8xf32>
    %81 = tpu.matmul %80, %66, %cst_22 {dimension_numbers = #tpu.dot_dimension_numbers<[2], [1], [1], [2], [0, 0, 0, 1, 1, 2], [0], [0]>} : vector<4x16x16xbf16>, vector<4x16x8xbf16>, vector<4x16x8xf32> -> vector<4x16x8xf32>
    %82 = arith.truncf %81 : vector<4x16x8xf32> to vector<4x16x8xbf16>
    %c0_23 = arith.constant 0 : index
    %c0_24 = arith.constant 0 : index
    %c0_25 = arith.constant 0 : index
    %c0_26 = arith.constant 0 : index
    %83 = vector.load %arg6[%c0_23, %c0_24, %c0_25, %c0_26] : memref<2x4x8x32xbf16, #tpu.memory_space<vmem>>, vector<1x4x8x32xbf16>
    %84 = vector.shape_cast %83 : vector<1x4x8x32xbf16> to vector<4x8x32xbf16>
    %cst_27 = arith.constant dense<0.000000e+00> : vector<4x16x32xf32>
    %85 = tpu.matmul %82, %84, %cst_27 {dimension_numbers = #tpu.dot_dimension_numbers<[2], [1], [1], [2], [0, 0, 0, 1, 1, 2], [0], [0]>} : vector<4x16x8xbf16>, vector<4x8x32xbf16>, vector<4x16x32xf32> -> vector<4x16x32xf32>
    %cst_28 = arith.constant dense<0.000000e+00> : vector<16x32xf32>
    %86 = vector.multi_reduction <add>, %85, %cst_28 [0] : vector<4x16x32xf32> to vector<16x32xf32>
    %c0_29 = arith.constant 0 : index
    %c0_30 = arith.constant 0 : index
    %c0_31 = arith.constant 0 : index
    %87 = vector.load %arg7[%c0_29, %c0_30, %c0_31] : memref<2x1x32xf32, #tpu.memory_space<vmem>>, vector<1x1x32xf32>
    %88 = vector.shape_cast %87 : vector<1x1x32xf32> to vector<1x32xf32>
    %89 = vector.broadcast %88 : vector<1x32xf32> to vector<16x32xf32>
    %90 = arith.addf %86, %89 : vector<16x32xf32>
    %91 = arith.addf %29, %90 : vector<16x32xf32>
    %c0_32 = arith.constant 0 : index
    %c0_33 = arith.constant 0 : index
    %c0_34 = arith.constant 0 : index
    %92 = vector.load %arg8[%c0_32, %c0_33, %c0_34] : memref<2x1x32xf32, #tpu.memory_space<vmem>>, vector<1x1x32xf32>
    %93 = vector.shape_cast %92 : vector<1x1x32xf32> to vector<1x32xf32>
    %c0_35 = arith.constant 0 : index
    %c0_36 = arith.constant 0 : index
    %c0_37 = arith.constant 0 : index
    %94 = vector.load %arg9[%c0_35, %c0_36, %c0_37] : memref<2x1x32xf32, #tpu.memory_space<vmem>>, vector<1x1x32xf32>
    %95 = vector.shape_cast %94 : vector<1x1x32xf32> to vector<1x32xf32>
    %cst_38 = arith.constant dense<0.000000e+00> : vector<16xf32>
    %96 = vector.multi_reduction <add>, %91, %cst_38 [1] : vector<16x32xf32> to vector<16xf32>
    %97 = vector.shape_cast %96 : vector<16xf32> to vector<16x1xf32>
    %cst_39 = arith.constant 3.200000e+01 : f32
    %98 = vector.broadcast %cst_39 : f32 to vector<16x1xf32>
    %99 = arith.divf %97, %98 : vector<16x1xf32>
    %100 = vector.broadcast %99 : vector<16x1xf32> to vector<16x32xf32>
    %101 = arith.subf %91, %100 : vector<16x32xf32>
    %102 = arith.mulf %101, %101 : vector<16x32xf32>
    %cst_40 = arith.constant dense<0.000000e+00> : vector<16xf32>
    %103 = vector.multi_reduction <add>, %102, %cst_40 [1] : vector<16x32xf32> to vector<16xf32>
    %104 = vector.shape_cast %103 : vector<16xf32> to vector<16x1xf32>
    %cst_41 = arith.constant 3.200000e+01 : f32
    %105 = vector.broadcast %cst_41 : f32 to vector<16x1xf32>
    %106 = arith.divf %104, %105 : vector<16x1xf32>
    %cst_42 = arith.constant 9.99999974E-6 : f32
    %107 = vector.broadcast %cst_42 : f32 to vector<16x1xf32>
    %108 = arith.addf %106, %107 : vector<16x1xf32>
    %109 = math.rsqrt %108 : vector<16x1xf32>
    %110 = vector.broadcast %109 : vector<16x1xf32> to vector<16x32xf32>
    %111 = arith.mulf %101, %110 : vector<16x32xf32>
    %112 = vector.broadcast %93 : vector<1x32xf32> to vector<16x32xf32>
    %113 = arith.mulf %111, %112 : vector<16x32xf32>
    %114 = vector.broadcast %95 : vector<1x32xf32> to vector<16x32xf32>
    %115 = arith.addf %113, %114 : vector<16x32xf32>
    %116 = arith.truncf %115 : vector<16x32xf32> to vector<16x32xbf16>
    %c0_43 = arith.constant 0 : index
    %c0_44 = arith.constant 0 : index
    %c0_45 = arith.constant 0 : index
    %117 = vector.load %arg10[%c0_43, %c0_44, %c0_45] : memref<2x32x64xbf16, #tpu.memory_space<vmem>>, vector<1x32x64xbf16>
    %118 = vector.shape_cast %117 : vector<1x32x64xbf16> to vector<32x64xbf16>
    %cst_46 = arith.constant dense<0.000000e+00> : vector<16x64xf32>
    %119 = tpu.matmul %116, %118, %cst_46 {dimension_numbers = #tpu.dot_dimension_numbers<[1], [0], [0], [1], [0, 0, 1, 1], [], []>} : vector<16x32xbf16>, vector<32x64xbf16>, vector<16x64xf32> -> vector<16x64xf32>
    %c0_47 = arith.constant 0 : index
    %c0_48 = arith.constant 0 : index
    %c0_49 = arith.constant 0 : index
    %120 = vector.load %arg11[%c0_47, %c0_48, %c0_49] : memref<2x1x64xf32, #tpu.memory_space<vmem>>, vector<1x1x64xf32>
    %121 = vector.shape_cast %120 : vector<1x1x64xf32> to vector<1x64xf32>
    %122 = vector.broadcast %121 : vector<1x64xf32> to vector<16x64xf32>
    %123 = arith.addf %119, %122 : vector<16x64xf32>
    %cst_50 = arith.constant 0.000000e+00 : f32
    %124 = vector.broadcast %cst_50 : f32 to vector<16x64xf32>
    %125 = arith.maximumf %123, %124 : vector<16x64xf32>
    %126 = arith.truncf %125 : vector<16x64xf32> to vector<16x64xbf16>
    %c0_51 = arith.constant 0 : index
    %c0_52 = arith.constant 0 : index
    %c0_53 = arith.constant 0 : index
    %127 = vector.load %arg12[%c0_51, %c0_52, %c0_53] : memref<2x64x32xbf16, #tpu.memory_space<vmem>>, vector<1x64x32xbf16>
    %128 = vector.shape_cast %127 : vector<1x64x32xbf16> to vector<64x32xbf16>
    %cst_54 = arith.constant dense<0.000000e+00> : vector<16x32xf32>
    %129 = tpu.matmul %126, %128, %cst_54 {dimension_numbers = #tpu.dot_dimension_numbers<[1], [0], [0], [1], [0, 0, 1, 1], [], []>} : vector<16x64xbf16>, vector<64x32xbf16>, vector<16x32xf32> -> vector<16x32xf32>
    %c0_55 = arith.constant 0 : index
    %c0_56 = arith.constant 0 : index
    %c0_57 = arith.constant 0 : index
    %130 = vector.load %arg13[%c0_55, %c0_56, %c0_57] : memref<2x1x32xf32, #tpu.memory_space<vmem>>, vector<1x1x32xf32>
    %131 = vector.shape_cast %130 : vector<1x1x32xf32> to vector<1x32xf32>
    %132 = vector.broadcast %131 : vector<1x32xf32> to vector<16x32xf32>
    %133 = arith.addf %129, %132 : vector<16x32xf32>
    %134 = arith.addf %115, %133 : vector<16x32xf32>
    %c0_58 = arith.constant 0 : index
    %c0_59 = arith.constant 0 : index
    %c0_60 = arith.constant 0 : index
    %135 = vector.load %arg14[%c0_58, %c0_59, %c0_60] : memref<2x1x32xf32, #tpu.memory_space<vmem>>, vector<1x1x32xf32>
    %136 = vector.shape_cast %135 : vector<1x1x32xf32> to vector<1x32xf32>
    %c0_61 = arith.constant 0 : index
    %c0_62 = arith.constant 0 : index
    %c0_63 = arith.constant 0 : index
    %137 = vector.load %arg15[%c0_61, %c0_62, %c0_63] : memref<2x1x32xf32, #tpu.memory_space<vmem>>, vector<1x1x32xf32>
    %138 = vector.shape_cast %137 : vector<1x1x32xf32> to vector<1x32xf32>
    %cst_64 = arith.constant dense<0.000000e+00> : vector<16xf32>
    %139 = vector.multi_reduction <add>, %134, %cst_64 [1] : vector<16x32xf32> to vector<16xf32>
    %140 = vector.shape_cast %139 : vector<16xf32> to vector<16x1xf32>
    %cst_65 = arith.constant 3.200000e+01 : f32
    %141 = vector.broadcast %cst_65 : f32 to vector<16x1xf32>
    %142 = arith.divf %140, %141 : vector<16x1xf32>
    %143 = vector.broadcast %142 : vector<16x1xf32> to vector<16x32xf32>
    %144 = arith.subf %134, %143 : vector<16x32xf32>
    %145 = arith.mulf %144, %144 : vector<16x32xf32>
    %cst_66 = arith.constant dense<0.000000e+00> : vector<16xf32>
    %146 = vector.multi_reduction <add>, %145, %cst_66 [1] : vector<16x32xf32> to vector<16xf32>
    %147 = vector.shape_cast %146 : vector<16xf32> to vector<16x1xf32>
    %cst_67 = arith.constant 3.200000e+01 : f32
    %148 = vector.broadcast %cst_67 : f32 to vector<16x1xf32>
    %149 = arith.divf %147, %148 : vector<16x1xf32>
    %cst_68 = arith.constant 9.99999974E-6 : f32
    %150 = vector.broadcast %cst_68 : f32 to vector<16x1xf32>
    %151 = arith.addf %149, %150 : vector<16x1xf32>
    %152 = math.rsqrt %151 : vector<16x1xf32>
    %153 = vector.broadcast %152 : vector<16x1xf32> to vector<16x32xf32>
    %154 = arith.mulf %144, %153 : vector<16x32xf32>
    %155 = vector.broadcast %136 : vector<1x32xf32> to vector<16x32xf32>
    %156 = arith.mulf %154, %155 : vector<16x32xf32>
    %157 = vector.broadcast %138 : vector<1x32xf32> to vector<16x32xf32>
    %158 = arith.addf %156, %157 : vector<16x32xf32>
    %159 = arith.truncf %158 : vector<16x32xf32> to vector<16x32xbf16>
    %c1 = arith.constant 1 : index
    %c0_69 = arith.constant 0 : index
    %c0_70 = arith.constant 0 : index
    %160 = vector.load %arg4[%c1, %c0_69, %c0_70] : memref<2x32x96xbf16, #tpu.memory_space<vmem>>, vector<1x32x96xbf16>
    %161 = vector.shape_cast %160 : vector<1x32x96xbf16> to vector<32x96xbf16>
    %cst_71 = arith.constant dense<0.000000e+00> : vector<16x96xf32>
    %162 = tpu.matmul %159, %161, %cst_71 {dimension_numbers = #tpu.dot_dimension_numbers<[1], [0], [0], [1], [0, 0, 1, 1], [], []>} : vector<16x32xbf16>, vector<32x96xbf16>, vector<16x96xf32> -> vector<16x96xf32>
    %c1_72 = arith.constant 1 : index
    %c0_73 = arith.constant 0 : index
    %c0_74 = arith.constant 0 : index
    %163 = vector.load %arg5[%c1_72, %c0_73, %c0_74] : memref<2x1x96xf32, #tpu.memory_space<vmem>>, vector<1x1x96xf32>
    %164 = vector.shape_cast %163 : vector<1x1x96xf32> to vector<1x96xf32>
    %165 = vector.broadcast %164 : vector<1x96xf32> to vector<16x96xf32>
    %166 = arith.addf %162, %165 : vector<16x96xf32>
    %167 = arith.truncf %166 : vector<16x96xf32> to vector<16x96xbf16>
    %168 = vector.extract_strided_slice %167 {offsets = [0, 0], sizes = [16, 8], strides = [1, 1]} : vector<16x96xbf16> to vector<16x8xbf16>
    %169 = vector.extract_strided_slice %167 {offsets = [0, 8], sizes = [16, 8], strides = [1, 1]} : vector<16x96xbf16> to vector<16x8xbf16>
    %170 = vector.extract_strided_slice %167 {offsets = [0, 16], sizes = [16, 8], strides = [1, 1]} : vector<16x96xbf16> to vector<16x8xbf16>
    %171 = vector.extract_strided_slice %167 {offsets = [0, 24], sizes = [16, 8], strides = [1, 1]} : vector<16x96xbf16> to vector<16x8xbf16>
    %172 = vector.extract_strided_slice %167 {offsets = [0, 32], sizes = [16, 8], strides = [1, 1]} : vector<16x96xbf16> to vector<16x8xbf16>
    %173 = vector.extract_strided_slice %167 {offsets = [0, 40], sizes = [16, 8], strides = [1, 1]} : vector<16x96xbf16> to vector<16x8xbf16>
    %174 = vector.extract_strided_slice %167 {offsets = [0, 48], sizes = [16, 8], strides = [1, 1]} : vector<16x96xbf16> to vector<16x8xbf16>
    %175 = vector.extract_strided_slice %167 {offsets = [0, 56], sizes = [16, 8], strides = [1, 1]} : vector<16x96xbf16> to vector<16x8xbf16>
    %176 = vector.extract_strided_slice %167 {offsets = [0, 64], sizes = [16, 8], strides = [1, 1]} : vector<16x96xbf16> to vector<16x8xbf16>
    %177 = vector.extract_strided_slice %167 {offsets = [0, 72], sizes = [16, 8], strides = [1, 1]} : vector<16x96xbf16> to vector<16x8xbf16>
    %178 = vector.extract_strided_slice %167 {offsets = [0, 80], sizes = [16, 8], strides = [1, 1]} : vector<16x96xbf16> to vector<16x8xbf16>
    %179 = vector.extract_strided_slice %167 {offsets = [0, 88], sizes = [16, 8], strides = [1, 1]} : vector<16x96xbf16> to vector<16x8xbf16>
    %180 = vector.shape_cast %168 : vector<16x8xbf16> to vector<1x16x8xbf16>
    %181 = vector.shape_cast %169 : vector<16x8xbf16> to vector<1x16x8xbf16>
    %182 = vector.shape_cast %170 : vector<16x8xbf16> to vector<1x16x8xbf16>
    %183 = vector.shape_cast %171 : vector<16x8xbf16> to vector<1x16x8xbf16>
    %184 = vector.shape_cast %172 : vector<16x8xbf16> to vector<1x16x8xbf16>
    %185 = vector.shape_cast %173 : vector<16x8xbf16> to vector<1x16x8xbf16>
    %186 = vector.shape_cast %174 : vector<16x8xbf16> to vector<1x16x8xbf16>
    %187 = vector.shape_cast %175 : vector<16x8xbf16> to vector<1x16x8xbf16>
    %188 = vector.shape_cast %176 : vector<16x8xbf16> to vector<1x16x8xbf16>
    %189 = vector.shape_cast %177 : vector<16x8xbf16> to vector<1x16x8xbf16>
    %190 = vector.shape_cast %178 : vector<16x8xbf16> to vector<1x16x8xbf16>
    %191 = vector.shape_cast %179 : vector<16x8xbf16> to vector<1x16x8xbf16>
    %192 = tpu.concatenate %180, %181, %182, %183, %184, %185, %186, %187, %188, %189, %190, %191 in 0 : vector<1x16x8xbf16>, vector<1x16x8xbf16>, vector<1x16x8xbf16>, vector<1x16x8xbf16>, vector<1x16x8xbf16>, vector<1x16x8xbf16>, vector<1x16x8xbf16>, vector<1x16x8xbf16>, vector<1x16x8xbf16>, vector<1x16x8xbf16>, vector<1x16x8xbf16>, vector<1x16x8xbf16> -> vector<12x16x8xbf16>
    %193 = vector.extract_strided_slice %192 {offsets = [0, 0, 0], sizes = [4, 16, 8], strides = [1, 1, 1]} : vector<12x16x8xbf16> to vector<4x16x8xbf16>
    %194 = vector.extract_strided_slice %192 {offsets = [4, 0, 0], sizes = [4, 16, 8], strides = [1, 1, 1]} : vector<12x16x8xbf16> to vector<4x16x8xbf16>
    %195 = vector.extract_strided_slice %192 {offsets = [8, 0, 0], sizes = [4, 16, 8], strides = [1, 1, 1]} : vector<12x16x8xbf16> to vector<4x16x8xbf16>
    %cst_75 = arith.constant dense<0.000000e+00> : vector<4x16x16xf32>
    %196 = tpu.matmul %193, %194, %cst_75 {dimension_numbers = #tpu.dot_dimension_numbers<[2], [2], [1], [1], [0, 0, 0, 1, 1, 1], [0], [0]>} : vector<4x16x8xbf16>, vector<4x16x8xbf16>, vector<4x16x16xf32> -> vector<4x16x16xf32>
    %cst_76 = arith.constant 0.353553385 : f32
    %197 = vector.broadcast %cst_76 : f32 to vector<4x16x16xf32>
    %198 = arith.mulf %196, %197 : vector<4x16x16xf32>
    %cst_77 = arith.constant dense<0xFF800000> : vector<4x16xf32>
    %199 = vector.multi_reduction <maximumf>, %198, %cst_77 [2] : vector<4x16x16xf32> to vector<4x16xf32>
    %200 = vector.shape_cast %199 : vector<4x16xf32> to vector<4x16x1xf32>
    %201 = vector.broadcast %200 : vector<4x16x1xf32> to vector<4x16x16xf32>
    %202 = arith.subf %198, %201 : vector<4x16x16xf32>
    %203 = math.exp %202 : vector<4x16x16xf32>
    %cst_78 = arith.constant dense<0.000000e+00> : vector<4x16xf32>
    %204 = vector.multi_reduction <add>, %203, %cst_78 [2] : vector<4x16x16xf32> to vector<4x16xf32>
    %205 = vector.shape_cast %204 : vector<4x16xf32> to vector<4x16x1xf32>
    %206 = tpu.reciprocal %205 {approx = true} : vector<4x16x1xf32> -> vector<4x16x1xf32>
    %207 = vector.broadcast %206 : vector<4x16x1xf32> to vector<4x16x16xf32>
    %208 = arith.mulf %203, %207 : vector<4x16x16xf32>
    %209 = arith.truncf %208 : vector<4x16x16xf32> to vector<4x16x16xbf16>
    %cst_79 = arith.constant dense<0.000000e+00> : vector<4x16x8xf32>
    %210 = tpu.matmul %209, %195, %cst_79 {dimension_numbers = #tpu.dot_dimension_numbers<[2], [1], [1], [2], [0, 0, 0, 1, 1, 2], [0], [0]>} : vector<4x16x16xbf16>, vector<4x16x8xbf16>, vector<4x16x8xf32> -> vector<4x16x8xf32>
    %211 = arith.truncf %210 : vector<4x16x8xf32> to vector<4x16x8xbf16>
    %c1_80 = arith.constant 1 : index
    %c0_81 = arith.constant 0 : index
    %c0_82 = arith.constant 0 : index
    %c0_83 = arith.constant 0 : index
    %212 = vector.load %arg6[%c1_80, %c0_81, %c0_82, %c0_83] : memref<2x4x8x32xbf16, #tpu.memory_space<vmem>>, vector<1x4x8x32xbf16>
    %213 = vector.shape_cast %212 : vector<1x4x8x32xbf16> to vector<4x8x32xbf16>
    %cst_84 = arith.constant dense<0.000000e+00> : vector<4x16x32xf32>
    %214 = tpu.matmul %211, %213, %cst_84 {dimension_numbers = #tpu.dot_dimension_numbers<[2], [1], [1], [2], [0, 0, 0, 1, 1, 2], [0], [0]>} : vector<4x16x8xbf16>, vector<4x8x32xbf16>, vector<4x16x32xf32> -> vector<4x16x32xf32>
    %cst_85 = arith.constant dense<0.000000e+00> : vector<16x32xf32>
    %215 = vector.multi_reduction <add>, %214, %cst_85 [0] : vector<4x16x32xf32> to vector<16x32xf32>
    %c1_86 = arith.constant 1 : index
    %c0_87 = arith.constant 0 : index
    %c0_88 = arith.constant 0 : index
    %216 = vector.load %arg7[%c1_86, %c0_87, %c0_88] : memref<2x1x32xf32, #tpu.memory_space<vmem>>, vector<1x1x32xf32>
    %217 = vector.shape_cast %216 : vector<1x1x32xf32> to vector<1x32xf32>
    %218 = vector.broadcast %217 : vector<1x32xf32> to vector<16x32xf32>
    %219 = arith.addf %215, %218 : vector<16x32xf32>
    %220 = arith.addf %158, %219 : vector<16x32xf32>
    %c1_89 = arith.constant 1 : index
    %c0_90 = arith.constant 0 : index
    %c0_91 = arith.constant 0 : index
    %221 = vector.load %arg8[%c1_89, %c0_90, %c0_91] : memref<2x1x32xf32, #tpu.memory_space<vmem>>, vector<1x1x32xf32>
    %222 = vector.shape_cast %221 : vector<1x1x32xf32> to vector<1x32xf32>
    %c1_92 = arith.constant 1 : index
    %c0_93 = arith.constant 0 : index
    %c0_94 = arith.constant 0 : index
    %223 = vector.load %arg9[%c1_92, %c0_93, %c0_94] : memref<2x1x32xf32, #tpu.memory_space<vmem>>, vector<1x1x32xf32>
    %224 = vector.shape_cast %223 : vector<1x1x32xf32> to vector<1x32xf32>
    %cst_95 = arith.constant dense<0.000000e+00> : vector<16xf32>
    %225 = vector.multi_reduction <add>, %220, %cst_95 [1] : vector<16x32xf32> to vector<16xf32>
    %226 = vector.shape_cast %225 : vector<16xf32> to vector<16x1xf32>
    %cst_96 = arith.constant 3.200000e+01 : f32
    %227 = vector.broadcast %cst_96 : f32 to vector<16x1xf32>
    %228 = arith.divf %226, %227 : vector<16x1xf32>
    %229 = vector.broadcast %228 : vector<16x1xf32> to vector<16x32xf32>
    %230 = arith.subf %220, %229 : vector<16x32xf32>
    %231 = arith.mulf %230, %230 : vector<16x32xf32>
    %cst_97 = arith.constant dense<0.000000e+00> : vector<16xf32>
    %232 = vector.multi_reduction <add>, %231, %cst_97 [1] : vector<16x32xf32> to vector<16xf32>
    %233 = vector.shape_cast %232 : vector<16xf32> to vector<16x1xf32>
    %cst_98 = arith.constant 3.200000e+01 : f32
    %234 = vector.broadcast %cst_98 : f32 to vector<16x1xf32>
    %235 = arith.divf %233, %234 : vector<16x1xf32>
    %cst_99 = arith.constant 9.99999974E-6 : f32
    %236 = vector.broadcast %cst_99 : f32 to vector<16x1xf32>
    %237 = arith.addf %235, %236 : vector<16x1xf32>
    %238 = math.rsqrt %237 : vector<16x1xf32>
    %239 = vector.broadcast %238 : vector<16x1xf32> to vector<16x32xf32>
    %240 = arith.mulf %230, %239 : vector<16x32xf32>
    %241 = vector.broadcast %222 : vector<1x32xf32> to vector<16x32xf32>
    %242 = arith.mulf %240, %241 : vector<16x32xf32>
    %243 = vector.broadcast %224 : vector<1x32xf32> to vector<16x32xf32>
    %244 = arith.addf %242, %243 : vector<16x32xf32>
    %245 = arith.truncf %244 : vector<16x32xf32> to vector<16x32xbf16>
    %c1_100 = arith.constant 1 : index
    %c0_101 = arith.constant 0 : index
    %c0_102 = arith.constant 0 : index
    %246 = vector.load %arg10[%c1_100, %c0_101, %c0_102] : memref<2x32x64xbf16, #tpu.memory_space<vmem>>, vector<1x32x64xbf16>
    %247 = vector.shape_cast %246 : vector<1x32x64xbf16> to vector<32x64xbf16>
    %cst_103 = arith.constant dense<0.000000e+00> : vector<16x64xf32>
    %248 = tpu.matmul %245, %247, %cst_103 {dimension_numbers = #tpu.dot_dimension_numbers<[1], [0], [0], [1], [0, 0, 1, 1], [], []>} : vector<16x32xbf16>, vector<32x64xbf16>, vector<16x64xf32> -> vector<16x64xf32>
    %c1_104 = arith.constant 1 : index
    %c0_105 = arith.constant 0 : index
    %c0_106 = arith.constant 0 : index
    %249 = vector.load %arg11[%c1_104, %c0_105, %c0_106] : memref<2x1x64xf32, #tpu.memory_space<vmem>>, vector<1x1x64xf32>
    %250 = vector.shape_cast %249 : vector<1x1x64xf32> to vector<1x64xf32>
    %251 = vector.broadcast %250 : vector<1x64xf32> to vector<16x64xf32>
    %252 = arith.addf %248, %251 : vector<16x64xf32>
    %cst_107 = arith.constant 0.000000e+00 : f32
    %253 = vector.broadcast %cst_107 : f32 to vector<16x64xf32>
    %254 = arith.maximumf %252, %253 : vector<16x64xf32>
    %255 = arith.truncf %254 : vector<16x64xf32> to vector<16x64xbf16>
    %c1_108 = arith.constant 1 : index
    %c0_109 = arith.constant 0 : index
    %c0_110 = arith.constant 0 : index
    %256 = vector.load %arg12[%c1_108, %c0_109, %c0_110] : memref<2x64x32xbf16, #tpu.memory_space<vmem>>, vector<1x64x32xbf16>
    %257 = vector.shape_cast %256 : vector<1x64x32xbf16> to vector<64x32xbf16>
    %cst_111 = arith.constant dense<0.000000e+00> : vector<16x32xf32>
    %258 = tpu.matmul %255, %257, %cst_111 {dimension_numbers = #tpu.dot_dimension_numbers<[1], [0], [0], [1], [0, 0, 1, 1], [], []>} : vector<16x64xbf16>, vector<64x32xbf16>, vector<16x32xf32> -> vector<16x32xf32>
    %c1_112 = arith.constant 1 : index
    %c0_113 = arith.constant 0 : index
    %c0_114 = arith.constant 0 : index
    %259 = vector.load %arg13[%c1_112, %c0_113, %c0_114] : memref<2x1x32xf32, #tpu.memory_space<vmem>>, vector<1x1x32xf32>
    %260 = vector.shape_cast %259 : vector<1x1x32xf32> to vector<1x32xf32>
    %261 = vector.broadcast %260 : vector<1x32xf32> to vector<16x32xf32>
    %262 = arith.addf %258, %261 : vector<16x32xf32>
    %263 = arith.addf %244, %262 : vector<16x32xf32>
    %c1_115 = arith.constant 1 : index
    %c0_116 = arith.constant 0 : index
    %c0_117 = arith.constant 0 : index
    %264 = vector.load %arg14[%c1_115, %c0_116, %c0_117] : memref<2x1x32xf32, #tpu.memory_space<vmem>>, vector<1x1x32xf32>
    %265 = vector.shape_cast %264 : vector<1x1x32xf32> to vector<1x32xf32>
    %c1_118 = arith.constant 1 : index
    %c0_119 = arith.constant 0 : index
    %c0_120 = arith.constant 0 : index
    %266 = vector.load %arg15[%c1_118, %c0_119, %c0_120] : memref<2x1x32xf32, #tpu.memory_space<vmem>>, vector<1x1x32xf32>
    %267 = vector.shape_cast %266 : vector<1x1x32xf32> to vector<1x32xf32>
    %cst_121 = arith.constant dense<0.000000e+00> : vector<16xf32>
    %268 = vector.multi_reduction <add>, %263, %cst_121 [1] : vector<16x32xf32> to vector<16xf32>
    %269 = vector.shape_cast %268 : vector<16xf32> to vector<16x1xf32>
    %cst_122 = arith.constant 3.200000e+01 : f32
    %270 = vector.broadcast %cst_122 : f32 to vector<16x1xf32>
    %271 = arith.divf %269, %270 : vector<16x1xf32>
    %272 = vector.broadcast %271 : vector<16x1xf32> to vector<16x32xf32>
    %273 = arith.subf %263, %272 : vector<16x32xf32>
    %274 = arith.mulf %273, %273 : vector<16x32xf32>
    %cst_123 = arith.constant dense<0.000000e+00> : vector<16xf32>
    %275 = vector.multi_reduction <add>, %274, %cst_123 [1] : vector<16x32xf32> to vector<16xf32>
    %276 = vector.shape_cast %275 : vector<16xf32> to vector<16x1xf32>
    %cst_124 = arith.constant 3.200000e+01 : f32
    %277 = vector.broadcast %cst_124 : f32 to vector<16x1xf32>
    %278 = arith.divf %276, %277 : vector<16x1xf32>
    %cst_125 = arith.constant 9.99999974E-6 : f32
    %279 = vector.broadcast %cst_125 : f32 to vector<16x1xf32>
    %280 = arith.addf %278, %279 : vector<16x1xf32>
    %281 = math.rsqrt %280 : vector<16x1xf32>
    %282 = vector.broadcast %281 : vector<16x1xf32> to vector<16x32xf32>
    %283 = arith.mulf %273, %282 : vector<16x32xf32>
    %284 = vector.broadcast %265 : vector<1x32xf32> to vector<16x32xf32>
    %285 = arith.mulf %283, %284 : vector<16x32xf32>
    %286 = vector.broadcast %267 : vector<1x32xf32> to vector<16x32xf32>
    %287 = arith.addf %285, %286 : vector<16x32xf32>
    %c0_126 = arith.constant 0 : index
    %c0_127 = arith.constant 0 : index
    %288 = vector.load %arg16[%c0_126, %c0_127] : memref<1x32xf32, #tpu.memory_space<vmem>>, vector<1x32xf32>
    %c0_128 = arith.constant 0 : index
    %c0_129 = arith.constant 0 : index
    %289 = vector.load %arg17[%c0_128, %c0_129] : memref<1x32xf32, #tpu.memory_space<vmem>>, vector<1x32xf32>
    %cst_130 = arith.constant dense<0.000000e+00> : vector<16xf32>
    %290 = vector.multi_reduction <add>, %287, %cst_130 [1] : vector<16x32xf32> to vector<16xf32>
    %291 = vector.shape_cast %290 : vector<16xf32> to vector<16x1xf32>
    %cst_131 = arith.constant 3.200000e+01 : f32
    %292 = vector.broadcast %cst_131 : f32 to vector<16x1xf32>
    %293 = arith.divf %291, %292 : vector<16x1xf32>
    %294 = vector.broadcast %293 : vector<16x1xf32> to vector<16x32xf32>
    %295 = arith.subf %287, %294 : vector<16x32xf32>
    %296 = arith.mulf %295, %295 : vector<16x32xf32>
    %cst_132 = arith.constant dense<0.000000e+00> : vector<16xf32>
    %297 = vector.multi_reduction <add>, %296, %cst_132 [1] : vector<16x32xf32> to vector<16xf32>
    %298 = vector.shape_cast %297 : vector<16xf32> to vector<16x1xf32>
    %cst_133 = arith.constant 3.200000e+01 : f32
    %299 = vector.broadcast %cst_133 : f32 to vector<16x1xf32>
    %300 = arith.divf %298, %299 : vector<16x1xf32>
    %cst_134 = arith.constant 9.99999974E-6 : f32
    %301 = vector.broadcast %cst_134 : f32 to vector<16x1xf32>
    %302 = arith.addf %300, %301 : vector<16x1xf32>
    %303 = math.rsqrt %302 : vector<16x1xf32>
    %304 = vector.broadcast %303 : vector<16x1xf32> to vector<16x32xf32>
    %305 = arith.mulf %295, %304 : vector<16x32xf32>
    %306 = vector.broadcast %288 : vector<1x32xf32> to vector<16x32xf32>
    %307 = arith.mulf %305, %306 : vector<16x32xf32>
    %308 = vector.broadcast %289 : vector<1x32xf32> to vector<16x32xf32>
    %309 = arith.addf %307, %308 : vector<16x32xf32>
    %310 = arith.truncf %309 : vector<16x32xf32> to vector<16x32xbf16>
    %c0_135 = arith.constant 0 : index
    %c0_136 = arith.constant 0 : index
    %311 = vector.load %arg18[%c0_135, %c0_136] : memref<32x8xbf16, #tpu.memory_space<vmem>>, vector<32x8xbf16>
    %cst_137 = arith.constant dense<0.000000e+00> : vector<16x8xf32>
    %312 = tpu.matmul %310, %311, %cst_137 {dimension_numbers = #tpu.dot_dimension_numbers<[1], [0], [0], [1], [0, 0, 1, 1], [], []>} : vector<16x32xbf16>, vector<32x8xbf16>, vector<16x8xf32> -> vector<16x8xf32>
    %c0_138 = arith.constant 0 : index
    %c0_139 = arith.constant 0 : index
    %313 = vector.load %arg19[%c0_138, %c0_139] : memref<1x8xf32, #tpu.memory_space<vmem>>, vector<1x8xf32>
    %314 = vector.broadcast %313 : vector<1x8xf32> to vector<16x8xf32>
    %315 = arith.addf %312, %314 : vector<16x8xf32>
    %316 = vector.broadcast %15 : vector<16x1xf32> to vector<16x8xf32>
    %317 = arith.mulf %315, %316 : vector<16x8xf32>
    %318 = vector.broadcast %5 : vector<16x1xf32> to vector<16x8xf32>
    %319 = arith.addf %317, %318 : vector<16x8xf32>
    %c0_140 = arith.constant 0 : index
    %c0_141 = arith.constant 0 : index
    %c0_142 = arith.constant 0 : index
    %320 = vector.load %arg20[%c0_140, %c0_141, %c0_142] : memref<1x16x8xf32, #tpu.memory_space<vmem>>, vector<1x16x8xf32>
    %321 = vector.shape_cast %320 : vector<1x16x8xf32> to vector<16x8xf32>
    %322 = vector.shape_cast %319 : vector<16x8xf32> to vector<1x16x8xf32>
    tpu.vector_store %arg20[%c0_140, %c0_141, %c0_142], %322 {strides = array<i32>} : memref<1x16x8xf32, #tpu.memory_space<vmem>>, vector<1x16x8xf32>,
    return
  }
  func.func @transform_0(%arg0: i32) -> (i32, i32, i32) {
    %c0_i32 = arith.constant 0 : i32
    %c0_i32_0 = arith.constant 0 : i32
    %c0_i32_1 = arith.constant 0 : i32
    return %arg0, %c0_i32, %c0_i32_0 : i32, i32, i32
  }
  func.func @transform_1(%arg0: i32) -> (i32, i32) {
    %c0_i32 = arith.constant 0 : i32
    %c0_i32_0 = arith.constant 0 : i32
    %c0_i32_1 = arith.constant 0 : i32
    return %c0_i32, %c0_i32_0 : i32, i32
  }
  func.func @transform_2(%arg0: i32) -> (i32, i32) {
    %c0_i32 = arith.constant 0 : i32
    %c0_i32_0 = arith.constant 0 : i32
    %c0_i32_1 = arith.constant 0 : i32
    return %c0_i32, %c0_i32_0 : i32, i32
  }
  func.func @transform_3(%arg0: i32) -> (i32, i32, i32) {
    %c0_i32 = arith.constant 0 : i32
    %c0_i32_0 = arith.constant 0 : i32
    %c0_i32_1 = arith.constant 0 : i32
    %c0_i32_2 = arith.constant 0 : i32
    return %c0_i32, %c0_i32_0, %c0_i32_1 : i32, i32, i32
  }
  func.func @transform_4(%arg0: i32) -> (i32, i32, i32) {
    %c0_i32 = arith.constant 0 : i32
    %c0_i32_0 = arith.constant 0 : i32
    %c0_i32_1 = arith.constant 0 : i32
    %c0_i32_2 = arith.constant 0 : i32
    return %c0_i32, %c0_i32_0, %c0_i32_1 : i32, i32, i32
  }
  func.func @transform_5(%arg0: i32) -> (i32, i32, i32, i32) {
    %c0_i32 = arith.constant 0 : i32
    %c0_i32_0 = arith.constant 0 : i32
    %c0_i32_1 = arith.constant 0 : i32
    %c0_i32_2 = arith.constant 0 : i32
    %c0_i32_3 = arith.constant 0 : i32
    return %c0_i32, %c0_i32_0, %c0_i32_1, %c0_i32_2 : i32, i32, i32, i32
  }
  func.func @transform_6(%arg0: i32) -> (i32, i32, i32) {
    %c0_i32 = arith.constant 0 : i32
    %c0_i32_0 = arith.constant 0 : i32
    %c0_i32_1 = arith.constant 0 : i32
    %c0_i32_2 = arith.constant 0 : i32
    return %c0_i32, %c0_i32_0, %c0_i32_1 : i32, i32, i32
  }
  func.func @transform_7(%arg0: i32) -> (i32, i32, i32) {
    %c0_i32 = arith.constant 0 : i32
    %c0_i32_0 = arith.constant 0 : i32
    %c0_i32_1 = arith.constant 0 : i32
    %c0_i32_2 = arith.constant 0 : i32
    return %c0_i32, %c0_i32_0, %c0_i32_1 : i32, i32, i32
  }
  func.func @transform_8(%arg0: i32) -> (i32, i32, i32) {
    %c0_i32 = arith.constant 0 : i32
    %c0_i32_0 = arith.constant 0 : i32
    %c0_i32_1 = arith.constant 0 : i32
    %c0_i32_2 = arith.constant 0 : i32
    return %c0_i32, %c0_i32_0, %c0_i32_1 : i32, i32, i32
  }
  func.func @transform_9(%arg0: i32) -> (i32, i32, i32) {
    %c0_i32 = arith.constant 0 : i32
    %c0_i32_0 = arith.constant 0 : i32
    %c0_i32_1 = arith.constant 0 : i32
    %c0_i32_2 = arith.constant 0 : i32
    return %c0_i32, %c0_i32_0, %c0_i32_1 : i32, i32, i32
  }
  func.func @transform_10(%arg0: i32) -> (i32, i32, i32) {
    %c0_i32 = arith.constant 0 : i32
    %c0_i32_0 = arith.constant 0 : i32
    %c0_i32_1 = arith.constant 0 : i32
    %c0_i32_2 = arith.constant 0 : i32
    return %c0_i32, %c0_i32_0, %c0_i32_1 : i32, i32, i32
  }
  func.func @transform_11(%arg0: i32) -> (i32, i32, i32) {
    %c0_i32 = arith.constant 0 : i32
    %c0_i32_0 = arith.constant 0 : i32
    %c0_i32_1 = arith.constant 0 : i32
    %c0_i32_2 = arith.constant 0 : i32
    return %c0_i32, %c0_i32_0, %c0_i32_1 : i32, i32, i32
  }
  func.func @transform_12(%arg0: i32) -> (i32, i32, i32) {
    %c0_i32 = arith.constant 0 : i32
    %c0_i32_0 = arith.constant 0 : i32
    %c0_i32_1 = arith.constant 0 : i32
    %c0_i32_2 = arith.constant 0 : i32
    return %c0_i32, %c0_i32_0, %c0_i32_1 : i32, i32, i32
  }
  func.func @transform_13(%arg0: i32) -> (i32, i32, i32) {
    %c0_i32 = arith.constant 0 : i32
    %c0_i32_0 = arith.constant 0 : i32
    %c0_i32_1 = arith.constant 0 : i32
    %c0_i32_2 = arith.constant 0 : i32
    return %c0_i32, %c0_i32_0, %c0_i32_1 : i32, i32, i32
  }
  func.func @transform_14(%arg0: i32) -> (i32, i32, i32) {
    %c0_i32 = arith.constant 0 : i32
    %c0_i32_0 = arith.constant 0 : i32
    %c0_i32_1 = arith.constant 0 : i32
    %c0_i32_2 = arith.constant 0 : i32
    return %c0_i32, %c0_i32_0, %c0_i32_1 : i32, i32, i32
  }
  func.func @transform_15(%arg0: i32) -> (i32, i32) {
    %c0_i32 = arith.constant 0 : i32
    %c0_i32_0 = arith.constant 0 : i32
    %c0_i32_1 = arith.constant 0 : i32
    return %c0_i32, %c0_i32_0 : i32, i32
  }
  func.func @transform_16(%arg0: i32) -> (i32, i32) {
    %c0_i32 = arith.constant 0 : i32
    %c0_i32_0 = arith.constant 0 : i32
    %c0_i32_1 = arith.constant 0 : i32
    return %c0_i32, %c0_i32_0 : i32, i32
  }
  func.func @transform_17(%arg0: i32) -> (i32, i32) {
    %c0_i32 = arith.constant 0 : i32
    %c0_i32_0 = arith.constant 0 : i32
    %c0_i32_1 = arith.constant 0 : i32
    return %c0_i32, %c0_i32_0 : i32, i32
  }
  func.func @transform_18(%arg0: i32) -> (i32, i32) {
    %c0_i32 = arith.constant 0 : i32
    %c0_i32_0 = arith.constant 0 : i32
    %c0_i32_1 = arith.constant 0 : i32
    return %c0_i32, %c0_i32_0 : i32, i32
  }
  func.func @transform_19(%arg0: i32) -> (i32, i32, i32) {
    %c0_i32 = arith.constant 0 : i32
    %c0_i32_0 = arith.constant 0 : i32
    %c0_i32_1 = arith.constant 0 : i32
    return %arg0, %c0_i32, %c0_i32_0 : i32, i32, i32
  }
}

</mosaic_0001>

<bundles_post_ra>
// kernel: tpu_custom_call.1
= control target key start
LH: loop header
LB: loop body
LE: loop exit
PB: predicated region body
PF: predicated region fallthrough
CT: control target
= control target key end

     0   :  { %s3375_s0 = inlined_call_operand.vmem [shape: f32[2,16,16], index: 0, kind: input, shape index: {}]   ;;  %s3376_s1 = inlined_call_operand.vmem [shape: bf16[16,32], index: 1, kind: input, shape index: {}]   ;;  %s3377_s2 = inlined_call_operand.vmem [shape: f32[1,32], index: 2, kind: input, shape index: {}]   ;;  %s3378_s3 = inlined_call_operand.vmem [shape: bf16[2,32,96], index: 3, kind: input, shape index: {}]   ;;  %s3379_s4 = inlined_call_operand.vmem [shape: f32[2,1,96], index: 4, kind: input, shape index: {}]   ;;  %s3380_s5 = inlined_call_operand.vmem [shape: bf16[2,4,8,32], index: 5, kind: input, shape index: {}]   ;;  %s3381_s6 = inlined_call_operand.vmem [shape: f32[2,1,32], index: 6, kind: input, shape index: {}]   ;;  %s3382_s7 = inlined_call_operand.vmem [shape: f32[2,1,32], index: 7, kind: input, shape index: {}]   ;;  %s3383_s8 = inlined_call_operand.vmem [shape: f32[2,1,32], index: 8, kind: input, shape index: {}]   ;;  %s3384_s9 = inlined_call_operand.hbm [shape: bf16[2,32,64], index: 9, kind: input, shape index: {}]   ;;  %s3385_s10 = inlined_call_operand.vmem [shape: f32[2,1,64], index: 10, kind: input, shape index: {}]   ;;  %s3386_s11 = inlined_call_operand.vmem [shape: bf16[2,64,32], index: 11, kind: input, shape index: {}]   ;;  %s3387_s12 = inlined_call_operand.vmem [shape: f32[2,1,32], index: 12, kind: input, shape index: {}]   ;;  %s3388_s13 = inlined_call_operand.vmem [shape: f32[2,1,32], index: 13, kind: input, shape index: {}]   ;;  %s3389_s14 = inlined_call_operand.vmem [shape: f32[2,1,32], index: 14, kind: input, shape index: {}]   ;;  %s3390_s15 = inlined_call_operand.vmem [shape: f32[1,32], index: 15, kind: input, shape index: {}]   ;;  %s3391_s16 = inlined_call_operand.vmem [shape: f32[1,32], index: 16, kind: input, shape index: {}]   ;;  %s3392_s17 = inlined_call_operand.vmem [shape: bf16[32,8], index: 17, kind: input, shape index: {}]   ;;  %s3393_s18 = inlined_call_operand.vmem [shape: f32[1,8], index: 18, kind: input, shape index: {}]   ;;  %s3394_s19 = inlined_call_operand.vmem [shape: f32[2,16,8], index: 19, kind: output, shape index: {}]  }
   0x1   :  { %3413 = sst [smem:[#allocation5_spill]] %s3375_s0 }
   0x2   :  { %3414 = sst [smem:[#allocation6_spill]] %s3376_s1 }
   0x3   :  { %3415 = sst [smem:[#allocation7_spill]] %s3377_s2 }
   0x4   :  { %3416 = sst [smem:[#allocation8_spill]] %s3378_s3 }
   0x5   :  { %24 = vsyncpa [#allocation3], 0  ;;  %s2892_s0 = smov 0  }
   0x6 LB: > { %s500_s21 = sshll.u32 %s3384_s9, 4  ;;  %s2418_s1 = sadd.s32 4294967295, %s2774_s0   ;;  %s2774_s0 = sphi %s2892_s0, %s30_s0   ;;  %s501_s21 = int_to_ptr.hbm [resolvable:$true] %s500_s21 }
   0x7   : > { %p2420_p0 = scmp.ge.s32.totalorder %s2774_s0, 1  ;;  %p465_p1 = scmp.lt.s32.totalorder %s2774_s0, 3 }
   0x8   : > { %p2592_p2 = scmp.eq.s32.totalorder %s2418_s1, 0  ;;  %s2776_s22 = smov [#allocation2]  }
   0x9   : > { %p466_p3 = pnand %p2420_p0, %p465_p1  ;;  %s502_s2 = sshll.u32 %s2776_s22, 4  ;;  %s503_s2 = int_to_ptr.vmem [resolvable:$true] %s502_s2 }
   0xa   : > { %s2777_s23 = smov 64   ;;  %s2778_s24 = smov 4  }
   0xb   : > { %p2588_p4 = pneg %p466_p3  ;;  %553 = sbr.rel (%p466_p3) target bundleno = 4502 (0x1196), region = 96 }
   0xd   : > { %p2589_p5 = pnand %p2592_p2, %p2588_p4 }
   0xf   : > { %2591 = dma.hbm_to_vmem [thread:$0]  (!%p2589_p5), %s501_s21, 512, %s503_s2, [#allocation3], %s2777_s23, %s2777_s23, %s2778_s24  }
  0x10   : > { %2769 = dma.done.wait (%p2592_p2), [#allocation3], 512  }
  0x11   : > { %2771 = vsyncadd (%p2592_p2), [#allocation3], 4294966784  ;;  %p610_p6 = scmp.lt.s32.totalorder %s2418_s1, 1  ;;  %s3417_s27 = sld [smem:[#allocation5_spill]]  ;;  %vm623_vm0 = vcmask 130048   ;;  %v2779_v4 = vmov 16.0   ;;  %v677_v51 = vlaneseq }
  0x12   : > { %2638 = vrcp.f32 %v2779_v4  ;;  %s3418_s20 = sld [smem:[#allocation6_spill]]  ;;  %vm769_vm15 = vcmask 261120   ;;  %s2780_s30 = smov 88  }
  0x13   : > { %s3431_s1 = smov (!%p610_p6, %s2418_s1), 1  ;;  %v678_v56 = vshrl.u32 %v677_v51, 7  ;;  %s3419_s2 = sld [smem:[#allocation8_spill]] }
  0x14   : > { %s3396_s25 = sshll.u32 %s3431_s1, 4  ;;  %s2782_s21 = smov 80  }
  0x15   : > { %v679_v62 = vadd.s32 8, %v678_v56  ;;  %s3407_s22 = smov 72   ;;  %s3409_s23 = smov 112  }
  0x16   : > { %s2785_s24 = smov 120   ;;  %s3405_s3 = smov 104  }
  0x17   : > { %s614_s28 = scalar_lea.vmem %s3417_s27, %s3396_s25  ;;  %vm681_vm13 = vcmp.lt.s32.totalorder %v679_v62, 12  ;;  %s3420_s27 = sld [smem:[#allocation7_spill]] }
  0x18   : > { %v2911_v0 = vld [vmem:[%s614_s28 + $0x8] sm:$0xff]  ;;  %v621_v1 = vld [vmem:[%s614_s28] sm:$0xff]  ;;  %v2639_v5 = vpop.eup %2638  ;;  %s3399_s26 = smov 64   ;;  %s3403_s28 = smov 48  }
  0x19   : > { %v627_v2 = vsel %vm623_vm0, %v2911_v0, 0.0  ;;  %v624_v3 = vsel %vm623_vm0, %v621_v1, 0.0  ;;  %v631_v6 = vmul.f32 16.0, %v2639_v5  ;;  %vm635_vm1 = vweird.f32 %v2639_v5  ;;  %v2565_v21 = vld [vmem:[%s3418_s20] sm:$0xff]  ;;  %s3411_s20 = smov 96   ;;  %s3397_s29 = smov 40  }
  0x1a   : > { %628 = vadd.xlane.f32.xlu0 %v627_v2  ;;  %741 = vmatpush.bf16.msra.mxu0 %v2565_v21  ;;  %v2619_v21 = vld [vmem:[%s3379_s4] ss:$0 sm:$0xff]  ;;  %s3427_s25 = smov 64  }
  0x1b   : > { %v632_v7 = vsub.f32 1.0, %v631_v6 }
  0x1d   : > { %v633_v8 = vmul.f32 %v2639_v5, %v632_v7 }
  0x1f   : > { %v634_v9 = vadd.f32 %v2639_v5, %v633_v8 }
  0x21   : > { %v636_v10 = vsel %vm635_vm1, %v2639_v5, %v634_v9  ;;  %vm841_vm1 = vcmask 64512  }
  0x22   : > { %625 = vadd.xlane.f32.xlu0 %v624_v3 }
  0x8d   : > { %v629_v11 = vpop.xlane.xlu0 %628 }
  0x8e   : > { %v2916_v12 = vmul.f32 %v636_v10, %v629_v11 }
  0x90   : > { %v2920_v13 = vsub.f32 %v2911_v0, %v2916_v12 }
  0x92   : > { %v642_v14 = vmul.f32 %v2920_v13, %v2920_v13 }
  0x94   : > { %v646_v15 = vsel %vm623_vm0, %v642_v14, 0.0  ;;  %v2567_v14 = vld [vmem:[%s3419_s2 + $0x8] sm:$0xff] }
  0x95   : > { %647 = vadd.xlane.f32.xlu1 %v646_v15  ;;  %v626_v16 = vpop.xlane.xlu0 %625  ;;  %779 = vmatpush.bf16.msra.mxu1 %v2567_v14 }
  0x96   : > { %v2925_v17 = vmul.f32 %v636_v10, %v626_v16  ;;  %v2618_v16 = vld [vmem:[%s3420_s27] ss:$0 sm:$0xff]  ;;  %s3401_s27 = smov 56  }
  0x98   : > { %v2928_v18 = vsub.f32 %v621_v1, %v2925_v17 }
  0x9a   : > { %v641_v19 = vmul.f32 %v2928_v18, %v2928_v18 }
  0x9c   : > { %v643_v20 = vsel %vm623_vm0, %v641_v19, 0.0 }
  0x9d   : > { %644 = vadd.xlane.f32.xlu1 %v643_v20 }
 0x108   : > { %v648_v22 = vpop.xlane.xlu1 %647 }
 0x109   : > { %v650_v23 = vmul.f32 %v648_v22, %v636_v10 }
 0x10b   : > { %v652_v24 = vadd.f32 1e-05, %v650_v23 }
 0x10d   : > { %2640 = vrsqrt.f32 %v652_v24  ;;  %vm672_vm2 = vcmp.eq.f32.partialorder %v652_v24, inf  ;;  %v675_v38 = vand.u32 2147483648, %v652_v24  ;;  %vm674_vm3 = vcmp.eq.f32.partialorder %v652_v24, 0.0 }
 0x110   : > { %v645_v25 = vpop.xlane.xlu1 %644 }
 0x111   : > { %v649_v26 = vmul.f32 %v645_v25, %v636_v10 }
 0x113   : > { %v2641_v27 = vpop.eup %2640  ;;  %v651_v28 = vadd.f32 1e-05, %v649_v26 }
 0x114   : > { %v666_v29 = vmul.f32 %v2641_v27, %v652_v24 }
 0x115   : > { %2642 = vrsqrt.f32 %v651_v28  ;;  %vm660_vm4 = vcmp.eq.f32.partialorder %v651_v28, inf  ;;  %v663_v45 = vand.u32 2147483648, %v651_v28  ;;  %vm662_vm5 = vcmp.eq.f32.partialorder %v651_v28, 0.0 }
 0x116   : > { %v667_v30 = vmul.f32 %v2641_v27, %v666_v29 }
 0x118   : > { %v668_v31 = vmul.f32 0.5, %v667_v30 }
 0x11a   : > { %v669_v32 = vsub.f32 1.5, %v668_v31 }
 0x11b   : > { %v2643_v33 = vpop.eup %2642 }
 0x11c   : > { %v670_v34 = vmul.f32 %v2641_v27, %v669_v32  ;;  %v654_v35 = vmul.f32 %v2643_v33, %v651_v28 }
 0x11e   : > { %v671_v36 = vmul.f32 %v670_v34, %v652_v24  ;;  %v655_v37 = vmul.f32 %v2643_v33, %v654_v35 }
 0x120   : > { %v656_v39 = vmul.f32 0.5, %v655_v37  ;;  %v673_v40 = vsel %vm672_vm2, %v652_v24, %v671_v36  ;;  %vm1168_vm2 = vcmask 1043456  }
 0x121   : > { %v2936_v41 = vsel %vm674_vm3, %v675_v38, %v673_v40 }
 0x122   : > { %v657_v42 = vsub.f32 1.5, %v656_v39  ;;  %2644 = vrcp.f32 %v2936_v41  ;;  %v708_v54 = vand.u32 2147483648, %v2936_v41  ;;  %vm702_vm7 = vweird.f32 %v2936_v41 }
 0x123   : > { %v706_v57 = vand.u32 2147483647, %v2936_v41 }
 0x124   : > { %v658_v43 = vmul.f32 %v2643_v33, %v657_v42  ;;  %v709_v61 = vor.u32 1.1754944e-38, %v708_v54 }
 0x125   : > { %vm707_vm9 = vcmp.eq.f32.partialorder %v706_v57, 8.507059e+37 }
 0x126   : > { %v659_v44 = vmul.f32 %v658_v43, %v651_v28 }
 0x128   : > { %v2645_v46 = vpop.eup %2644  ;;  %v661_v47 = vsel %vm660_vm4, %v651_v28, %v659_v44 }
 0x129   : > { %v2939_v48 = vsel %vm662_vm5, %v663_v45, %v661_v47  ;;  %v698_v49 = vmul.f32 %v2645_v46, %v2936_v41  ;;  %vm703_vm6 = vweird.f32 %v2645_v46 }
 0x12a   : > { %2646 = vrcp.f32 %v2939_v48  ;;  %vm704_vm8 = vmor %vm702_vm7, %vm703_vm6  ;;  %v693_v63 = vand.u32 2147483648, %v2939_v48  ;;  %v691_v2 = vand.u32 2147483647, %v2939_v48  ;;  %vm687_vm11 = vweird.f32 %v2939_v48 }
 0x12b   : > { %v699_v50 = vsub.f32 1.0, %v698_v49 }
 0x12c   : > { %v694_v5 = vor.u32 1.1754944e-38, %v693_v63  ;;  %vm692_vm14 = vcmp.eq.f32.partialorder %v691_v2, 8.507059e+37 }
 0x12d   : > { %v700_v52 = vmul.f32 %v2645_v46, %v699_v50 }
 0x12f   : > { %v701_v53 = vadd.f32 %v2645_v46, %v700_v52 }
 0x130   : > { %v2647_v55 = vpop.eup %2646 }
 0x131   : > { %v683_v58 = vmul.f32 %v2647_v55, %v2939_v48  ;;  %v705_v59 = vsel %vm704_vm8, %v2645_v46, %v701_v53  ;;  %vm688_vm10 = vweird.f32 %v2647_v55 }
 0x132   : > { %v710_v3 = vsel %vm707_vm9, %v709_v61, %v705_v59  ;;  %vm689_vm12 = vmor %vm687_vm11, %vm688_vm10  ;;  %vm1423_vm10 = vcmask 523264  }
 0x133   : > { %v684_v60 = vsub.f32 1.0, %v683_v58  ;;  %v711_v6 = vmul.f32 %v710_v3, %v2920_v13  ;;  %v2566_v13 = vld [vmem:[%s3419_s2] sm:$0xff] }
 0x134   : > { %780 = vmatpush.bf16.msra.mxu1 %v2566_v13 }
 0x135   : > { %v685_v1 = vmul.f32 %v2647_v55, %v684_v60  ;;  %v717_v10 = vsel %vm681_vm13, %v711_v6, %v2911_v0 }
 0x137   : > { %v686_v4 = vadd.f32 %v2647_v55, %v685_v1 }
 0x139   : > { %v690_v7 = vsel %vm689_vm12, %v2647_v55, %v686_v4 }
 0x13a   : > { %v695_v8 = vsel %vm692_vm14, %v694_v5, %v690_v7 }
 0x13b   : > { %v696_v9 = vmul.f32 %v695_v8, %v2928_v18 }
 0x13d   : > { %v718_v11 = vpack.c.bf16 %v717_v10, %v696_v9 }
 0x13f   : > { %2433 = vmatmul.msk.bf16.vlgmr.msra.gmra.mxu0 %vm623_vm0, %v718_v11 }
 0x1bc   : > { %v743_v15 = vpop.f32.mrf.mxu0 }
 0x1bd   : > { %v2963_v0 = vadd.f32 %v2618_v16, %v743_v15 }
 0x1c4   : > { %v745_v18 = vpop.f32.mrf.mxu0 }
 0x1c5   : > { %v2965_v19 = vadd.f32 %v2618_v16, %v745_v18 }
 0x1c7   : > { %v748_v20 = vpack.c.bf16 %v2965_v19, %v2963_v0 }
 0x1c9   : > { %2442 = vmatmul.msk.bf16.vlgmr.msra.gmra.mxu1 %vm769_vm15, %v748_v20 }
 0x246   : > { %v782_v22 = vpop.f32.mrf.mxu1 }
 0x247   : > { %v783_v23 = vadd.f32 %v2619_v21, %v782_v22 }
 0x249   : > { %v2973_v24 = vpack.c.bf16 %v783_v23, %v783_v23 }
 0x24b   : > { %807 = vrot.lane.b32.xlu0 %v2973_v24, %s2780_s30  ;;  %803 = vrot.lane.b32.xlu2 %v2973_v24, %s3411_s20  ;;  %v835_v36 = vunpack.c.l.b16 %v2973_v24 }
 0x24e   : > { %v784_v25 = vpop.f32.mrf.mxu1 }
 0x24f   : > { %v785_v26 = vadd.f32 %v2619_v21, %v784_v25 }
 0x251   : > { %v2979_v27 = vpack.c.bf16 %v785_v26, %v785_v26 }
 0x253   : > { %809 = vrot.lane.b32.xlu1 %v2979_v27, %s2780_s30  ;;  %813 = vrot.lane.b32.xlu0 %v2979_v27, %s2782_s21  ;;  %v836_v34 = vunpack.c.l.b16 %v2979_v27 }
 0x254   : > { %805 = vrot.lane.b32.xlu2 %v2979_v27, %s3411_s20 }
 0x255   : > { %v837_v37 = vpack.c.b16 %v836_v34, %v835_v36 }
 0x25b   : > { %817 = vrot.lane.b32.xlu1 %v2979_v27, %s3407_s22  ;;  %795 = vrot.lane.b32.xlu0 %v2973_v24, %s3409_s23 }
 0x25c   : > { %791 = vrot.lane.b32.xlu2 %v2973_v24, %s2785_s24 }
 0x263   : > { %799 = vrot.lane.b32.xlu1 %v2973_v24, %s3405_s3  ;;  %801 = vrot.lane.b32.xlu0 %v2979_v27, %s3405_s3 }
 0x264   : > { %793 = vrot.lane.b32.xlu2 %v2979_v27, %s2785_s24 }
 0x26b   : > { %821 = vrot.lane.b32.xlu1 %v2979_v27, %s3399_s26  ;;  %823 = vrot.lane.b32.xlu0 %v2973_v24, %s3401_s27 }
 0x26c   : > { %811 = vrot.lane.b32.xlu2 %v2973_v24, %s2782_s21 }
 0x274   : > { %815 = vrot.lane.b32.xlu2 %v2973_v24, %s3407_s22  ;;  %s3421_s22 = smov 96  }
 0x27c   : > { %797 = vrot.lane.b32.xlu2 %v2979_v27, %s3409_s23  ;;  %s3422_s23 = smov 112  }
 0x284   : > { %819 = vrot.lane.b32.xlu2 %v2973_v24, %s3399_s26 }
 0x2a5   : > { %v804_v28 = vpop.permute.xlu2 %803 }
 0x2a6   : > { %v838_v30 = vunpack.c.l.b16 %v804_v28 }
 0x2ae   : > { %v806_v29 = vpop.permute.xlu2 %805 }
 0x2af   : > { %v839_v31 = vunpack.c.l.b16 %v806_v29 }
 0x2b1   : > { %v840_v32 = vpack.c.b16 %v839_v31, %v838_v30 }
 0x2b3   : > { %v846_v33 = vsel %vm841_vm1, %v840_v32, 0 }
 0x2b4   : > { %855 = vmatpush.bf16.xpose.msra.mxu2 %v846_v33 }
 0x2b6   : > { %v792_v35 = vpop.permute.xlu2 %791 }
 0x2b7   : > { %v862_v56 = vunpack.c.l.b16 %v792_v35 }
 0x2bb   : > { %2443 = vmatmul.msk.bf16.vlgmr.msra.gmra.mxu2 %vm841_vm1, %v837_v37 }
 0x2bd   : > { %v808_v38 = vpop.permute.xlu0 %807 }
 0x2be   : > { %v794_v39 = vpop.permute.xlu2 %793  ;;  %v865_v43 = vunpack.c.l.b16 %v808_v38 }
 0x2bf   : > { %v863_v53 = vunpack.c.l.b16 %v794_v39 }
 0x2c1   : > { %v864_v60 = vpack.c.b16 %v863_v53, %v862_v56 }
 0x2c5   : > { %v810_v40 = vpop.permute.xlu1 %809  ;;  %v814_v42 = vpop.permute.xlu0 %813 }
 0x2c6   : > { %v866_v44 = vunpack.c.l.b16 %v810_v40  ;;  %v892_v45 = vunpack.c.l.b16 %v814_v42  ;;  %v812_v46 = vpop.permute.xlu2 %811 }
 0x2c7   : > { %v891_v47 = vunpack.c.l.b16 %v812_v46 }
 0x2c8   : > { %v867_v49 = vpack.c.b16 %v866_v44, %v865_v43 }
 0x2c9   : > { %v893_v50 = vpack.c.b16 %v892_v45, %v891_v47 }
 0x2ca   : > { %v872_v51 = vsel %vm841_vm1, %v867_v49, 0 }
 0x2cb   : > { %881 = vmatpush.bf16.xpose.msra.mxu3 %v872_v51  ;;  %v898_v52 = vsel %vm841_vm1, %v893_v50, 0 }
 0x2cc   : > { %907 = vmatpush.bf16.xpose.msrb.mxu0 %v898_v52 }
 0x2cd   : > { %v818_v54 = vpop.permute.xlu1 %817  ;;  %v796_v55 = vpop.permute.xlu0 %795 }
 0x2ce   : > { %v918_v57 = vunpack.c.l.b16 %v818_v54  ;;  %v816_v58 = vpop.permute.xlu2 %815  ;;  %v888_v5 = vunpack.c.l.b16 %v796_v55 }
 0x2cf   : > { %v917_v59 = vunpack.c.l.b16 %v816_v58 }
 0x2d1   : > { %v919_v61 = vpack.c.b16 %v918_v57, %v917_v59 }
 0x2d2   : > { %2444 = vmatmul.msk.bf16.vlgmr.msra.gmra.mxu3 %vm841_vm1, %v864_v60 }
 0x2d3   : > { %v924_v62 = vsel %vm841_vm1, %v919_v61, 0 }
 0x2d4   : > { %933 = vmatpush.bf16.xpose.msrb.mxu1 %v924_v62 }
 0x2d5   : > { %v800_v63 = vpop.permute.xlu1 %799  ;;  %v802_v1 = vpop.permute.xlu0 %801 }
 0x2d6   : > { %v914_v2 = vunpack.c.l.b16 %v800_v63  ;;  %v915_v3 = vunpack.c.l.b16 %v802_v1  ;;  %v798_v4 = vpop.permute.xlu2 %797 }
 0x2d7   : > { %v889_v6 = vunpack.c.l.b16 %v798_v4 }
 0x2d8   : > { %v916_v7 = vpack.c.b16 %v915_v3, %v914_v2 }
 0x2d9   : > { %v890_v8 = vpack.c.b16 %v889_v6, %v888_v5 }
 0x2db   : > { %2445 = vmatmul.msk.bf16.vlgmr.msrb.gmra.mxu0 %vm841_vm1, %v890_v8  ;;  %2446 = vmatmul.msk.bf16.vlgmr.msrb.gmra.mxu1 %vm841_vm1, %v916_v7 }
 0x2dd   : > { %v822_v9 = vpop.permute.xlu1 %821  ;;  %v824_v44 = vpop.permute.xlu0 %823 }
 0x2de   : > { %v1050_v10 = vunpack.c.l.b16 %v822_v9  ;;  %v820_v11 = vpop.permute.xlu2 %819 }
 0x2df   : > { %v1049_v14 = vunpack.c.l.b16 %v820_v11 }
 0x2e1   : > { %v1051_v13 = vpack.c.b16 %v1050_v10, %v1049_v14 }
 0x2e3   : > { %1063 = vmatpush.bf16.msrb.mxu2 %v1051_v13 }
 0x33e   : > { %v857_v25 = vpop.f32.mrf.mxu2 }
 0x33f   : > { %v940_v29 = vmul.f32 0.35355338, %v857_v25 }
 0x341   : > { %v948_v37 = vsel %vm623_vm0, %v940_v29, -inf }
 0x346   : > { %v859_v36 = vpop.f32.mrf.mxu2 }
 0x347   : > { %v941_v39 = vmul.f32 0.35355338, %v859_v36 }
 0x349   : > { %v951_v42 = vsel %vm623_vm0, %v941_v39, -inf }
 0x355   : > { %v883_v15 = vpop.f32.mrf.mxu3 }
 0x356   : > { %v942_v16 = vmul.f32 0.35355338, %v883_v15 }
 0x358   : > { %v909_v18 = vpop.f32.mrf.mxu0  ;;  %v935_v20 = vpop.f32.mrf.mxu1  ;;  %v954_v21 = vsel %vm623_vm0, %v942_v16, -inf }
 0x359   : > { %v944_v22 = vmul.f32 0.35355338, %v909_v18  ;;  %v946_v23 = vmul.f32 0.35355338, %v935_v20  ;;  %955 = vmax.xlane.f32.xlu0 %v954_v21 }
 0x35b   : > { %v966_v26 = vsel %vm623_vm0, %v946_v23, -inf  ;;  %v960_v28 = vsel %vm623_vm0, %v944_v22, -inf }
 0x35c   : > { %967 = vmax.xlane.f32.xlu2 %v966_v26  ;;  %961 = vmax.xlane.f32.xlu1 %v960_v28 }
 0x35d   : > { %v885_v38 = vpop.f32.mrf.mxu3 }
 0x35e   : > { %v943_v40 = vmul.f32 0.35355338, %v885_v38 }
 0x360   : > { %v911_v30 = vpop.f32.mrf.mxu0  ;;  %v937_v31 = vpop.f32.mrf.mxu1  ;;  %v957_v43 = vsel %vm623_vm0, %v943_v40, -inf }
 0x361   : > { %v945_v32 = vmul.f32 0.35355338, %v911_v30  ;;  %v947_v33 = vmul.f32 0.35355338, %v937_v31 }
 0x363   : > { %v969_v34 = vsel %vm623_vm0, %v947_v33, -inf  ;;  %v963_v35 = vsel %vm623_vm0, %v945_v32, -inf }
 0x364   : > { %970 = vmax.xlane.f32.xlu1 %v969_v34  ;;  %964 = vmax.xlane.f32.xlu0 %v963_v35 }
 0x365   : > { %949 = vmax.xlane.f32.xlu2 %v948_v37 }
 0x36c   : > { %952 = vmax.xlane.f32.xlu1 %v951_v42 }
 0x36d   : > { %958 = vmax.xlane.f32.xlu2 %v957_v43 }
 0x385   : > { %825 = vrot.lane.b32.xlu2 %v2979_v27, %s3401_s27  ;;  %827 = vrot.lane.b32.xlu1 %v2973_v24, %s3403_s28 }
 0x3cc   : > { %v956_v45 = vpop.xlane.xlu0 %955 }
 0x3cd   : > { %v974_v46 = vsub.f32 %v942_v16, %v956_v45 }
 0x3cf   : > { %v984_v47 = vmul.f32 1.442695, %v974_v46  ;;  %v962_v49 = vpop.xlane.xlu1 %961  ;;  %v968_v50 = vpop.xlane.xlu2 %967 }
 0x3d0   : > { %v976_v51 = vsub.f32 %v944_v22, %v962_v49  ;;  %v978_v52 = vsub.f32 %v946_v23, %v968_v50  ;;  %v1075_v22 = vunpack.c.l.b16 %v824_v44 }
 0x3d1   : > { %2648 = vpow2.f32 %v984_v47 }
 0x3d2   : > { %v988_v53 = vmul.f32 1.442695, %v976_v51  ;;  %v992_v54 = vmul.f32 1.442695, %v978_v52 }
 0x3d4   : > { %2650 = vpow2.f32 %v988_v53 }
 0x3d5   : > { %2652 = vpow2.f32 %v992_v54 }
 0x3d7   : > { %v3033_v55 = vpop.eup %2648  ;;  %v971_v56 = vpop.xlane.xlu1 %970 }
 0x3d8   : > { %v965_v57 = vpop.xlane.xlu0 %964  ;;  %v950_v59 = vpop.xlane.xlu2 %949  ;;  %v1002_v60 = vsel %vm623_vm0, %v3033_v55, 0.0  ;;  %v979_v2 = vsub.f32 %v947_v33, %v971_v56 }
 0x3d9   : > { %v977_v58 = vsub.f32 %v945_v32, %v965_v57  ;;  %v972_v61 = vsub.f32 %v940_v29, %v950_v59  ;;  %1003 = vadd.xlane.f32.xlu1 %v1002_v60 }
 0x3da   : > { %v2651_v62 = vpop.eup %2650  ;;  %v994_v6 = vmul.f32 1.442695, %v979_v2 }
 0x3db   : > { %v990_v63 = vmul.f32 1.442695, %v977_v58  ;;  %v3037_v1 = vpop.eup %2652  ;;  %v980_v3 = vmul.f32 1.442695, %v972_v61  ;;  %v1008_v4 = vsel %vm623_vm0, %v2651_v62, 0.0 }
 0x3dc   : > { %1009 = vadd.xlane.f32.xlu0 %v1008_v4  ;;  %v1014_v5 = vsel %vm623_vm0, %v3037_v1, 0.0 }
 0x3dd   : > { %2654 = vpow2.f32 %v990_v63  ;;  %1015 = vadd.xlane.f32.xlu2 %v1014_v5 }
 0x3de   : > { %2656 = vpow2.f32 %v980_v3 }
 0x3df   : > { %v953_v7 = vpop.xlane.xlu1 %952  ;;  %2658 = vpow2.f32 %v994_v6 }
 0x3e0   : > { %v959_v8 = vpop.xlane.xlu2 %958  ;;  %v973_v9 = vsub.f32 %v941_v39, %v953_v7 }
 0x3e1   : > { %v975_v13 = vsub.f32 %v943_v40, %v959_v8 }
 0x3e2   : > { %v982_v10 = vmul.f32 1.442695, %v973_v9 }
 0x3e3   : > { %v2655_v11 = vpop.eup %2654  ;;  %v986_v18 = vmul.f32 1.442695, %v975_v13 }
 0x3e4   : > { %v2657_v14 = vpop.eup %2656  ;;  %2660 = vpow2.f32 %v982_v10  ;;  %v1011_v15 = vsel %vm623_vm0, %v2655_v11, 0.0 }
 0x3e5   : > { %v996_v16 = vsel %vm623_vm0, %v2657_v14, 0.0  ;;  %1012 = vadd.xlane.f32.xlu1 %v1011_v15  ;;  %v3044_v21 = vpop.eup %2658  ;;  %2662 = vpow2.f32 %v986_v18 }
 0x3e6   : > { %997 = vadd.xlane.f32.xlu0 %v996_v16  ;;  %v1017_v29 = vsel %vm623_vm0, %v3044_v21, 0.0 }
 0x3e8   : > { %v826_v20 = vpop.permute.xlu2 %825 }
 0x3e9   : > { %v1076_v23 = vunpack.c.l.b16 %v826_v20 }
 0x3ea   : > { %v2661_v25 = vpop.eup %2660 }
 0x3eb   : > { %v1077_v26 = vpack.c.b16 %v1076_v23, %v1075_v22  ;;  %v999_v28 = vsel %vm623_vm0, %v2661_v25, 0.0  ;;  %v2663_v30 = vpop.eup %2662 }
 0x3ec   : > { %1000 = vadd.xlane.f32.xlu2 %v999_v28  ;;  %v1005_v31 = vsel %vm623_vm0, %v2663_v30, 0.0 }
 0x3ed   : > { %1089 = vmatpush.bf16.msrb.mxu3 %v1077_v26 }
 0x3ee   : > { %1018 = vadd.xlane.f32.xlu0 %v1017_v29 }
 0x3f6   : > { %1006 = vadd.xlane.f32.xlu0 %v1005_v31 }
 0x3f7   : > { %v828_v32 = vpop.permute.xlu1 %827 }
 0x3f8   : > { %v1101_v52 = vunpack.c.l.b16 %v828_v32  ;;  %v1157_v32 = vld [vmem:[%s3380_s5 + $0x4] sm:$0xf] }
 0x3fe   : > { %833 = vrot.lane.b32.xlu1 %v2979_v27, %s3397_s29 }
 0x404   : > { %829 = vrot.lane.b32.xlu2 %v2979_v27, %s3403_s28  ;;  %s3423_s28 = smov 72  }
 0x40a   : > { %831 = vrot.lane.b32.xlu0 %v2973_v24, %s3397_s29  ;;  %s3428_s29 = smov 40  }
 0x44c   : > { %v1004_v34 = vpop.xlane.xlu1 %1003 }
 0x44f   : > { %v1010_v33 = vpop.xlane.xlu0 %1009 }
 0x450   : > { %v1016_v35 = vpop.xlane.xlu2 %1015  ;;  %2664 = vrcp.f32 %v1010_v33  ;;  %v1195_v33 = vsel %vm1168_vm2, %v1157_v32, 0 }
 0x451   : > { %1204 = vmatpush.bf16.msra.mxu3 %v1195_v33 }
 0x456   : > { %v2665_v38 = vpop.eup %2664 }
 0x457   : > { %v1032_v27 = vmul.f32 %v2665_v38, %v2651_v62 }
 0x458   : > { %v1013_v36 = vpop.xlane.xlu1 %1012 }
 0x459   : > { %v998_v37 = vpop.xlane.xlu0 %997  ;;  %2666 = vrcp.f32 %v1013_v36  ;;  %v1040_v47 = vpack.c.bf16 %v1032_v27, %v1032_v27 }
 0x45a   : > { %2668 = vrcp.f32 %v998_v37 }
 0x45b   : > { %v1098_v60 = vunpack.c.l.b16 %v1040_v47 }
 0x45f   : > { %v2667_v39 = vpop.eup %2666  ;;  %v1001_v40 = vpop.xlane.xlu2 %1000 }
 0x460   : > { %v2669_v42 = vpop.eup %2668  ;;  %2670 = vrcp.f32 %v1001_v40  ;;  %v1033_v43 = vmul.f32 %v2667_v39, %v2655_v11 }
 0x461   : > { %v1019_v44 = vpop.xlane.xlu0 %1018  ;;  %v1028_v45 = vmul.f32 %v2669_v42, %v2657_v14  ;;  %2672 = vrcp.f32 %v1004_v34  ;;  %v1159_v34 = vld [vmem:[%s3380_s5 + $0xc] sm:$0xf] }
 0x462   : > { %v1041_v24 = vpack.c.bf16 %v1033_v43, %v1033_v43  ;;  %v1245_v36 = vsel %vm1168_vm2, %v1159_v34, 0 }
 0x463   : > { %v1036_v49 = vpack.c.bf16 %v1028_v45, %v1028_v45 }
 0x464   : > { %v1099_v54 = vunpack.c.l.b16 %v1041_v24 }
 0x465   : > { %v1046_v61 = vunpack.c.l.b16 %v1036_v49 }
 0x466   : > { %v2671_v46 = vpop.eup %2670  ;;  %v1100_v2 = vpack.c.b16 %v1099_v54, %v1098_v60 }
 0x467   : > { %v1029_v50 = vmul.f32 %v2671_v46, %v2661_v25  ;;  %v830_v51 = vpop.permute.xlu2 %829  ;;  %v2673_v58 = vpop.eup %2672 }
 0x468   : > { %v1102_v53 = vunpack.c.l.b16 %v830_v51  ;;  %v1030_v62 = vmul.f32 %v2673_v58, %v3033_v55 }
 0x469   : > { %v1037_v56 = vpack.c.bf16 %v1029_v50, %v1029_v50  ;;  %v1007_v57 = vpop.xlane.xlu0 %1006 }
 0x46a   : > { %2674 = vrcp.f32 %v1007_v57  ;;  %v1103_v59 = vpack.c.b16 %v1102_v53, %v1101_v52  ;;  %v1038_v5 = vpack.c.bf16 %v1030_v62, %v1030_v62 }
 0x46b   : > { %v1047_v63 = vunpack.c.l.b16 %v1037_v56  ;;  %2676 = vrcp.f32 %v1019_v44 }
 0x46c   : > { %1115 = vmatpush.bf16.msra.mxu0 %v1103_v59  ;;  %2678 = vrcp.f32 %v1016_v35  ;;  %v1072_v10 = vunpack.c.l.b16 %v1038_v5 }
 0x46d   : > { %v1048_v3 = vpack.c.b16 %v1047_v63, %v1046_v61 }
 0x46f   : > { %2447 = vmatmul.msk.bf16.vlgmr.msrb.gmra.mxu2 %vm623_vm0, %v1048_v3  ;;  %2449 = vmatmul.msk.bf16.vlgmr.msra.gmra.mxu0 %vm623_vm0, %v1100_v2 }
 0x470   : > { %v2675_v4 = vpop.eup %2674  ;;  %v834_v16 = vpop.permute.xlu1 %833 }
 0x471   : > { %v1031_v6 = vmul.f32 %v2675_v4, %v2663_v30  ;;  %v2677_v7 = vpop.eup %2676  ;;  %v1128_v22 = vunpack.c.l.b16 %v834_v16  ;;  %v1156_v30 = vld [vmem:[%s3380_s5] sm:$0xf] }
 0x472   : > { %v2679_v9 = vpop.eup %2678  ;;  %v1035_v14 = vmul.f32 %v2677_v7, %v3044_v21  ;;  %v1158_v21 = vld [vmem:[%s3380_s5 + $0x8] sm:$0xf]  ;;  %v1170_v31 = vsel %vm1168_vm2, %v1156_v30, 0 }
 0x473   : > { %v1039_v8 = vpack.c.bf16 %v1031_v6, %v1031_v6  ;;  %v1034_v55 = vmul.f32 %v2679_v9, %v3037_v1  ;;  %v1220_v1 = vsel %vm1168_vm2, %v1158_v21, 0  ;;  %1179 = vmatpush.bf16.msra.mxu2 %v1170_v31 }
 0x474   : > { %v1043_v15 = vpack.c.bf16 %v1035_v14, %v1035_v14  ;;  %1229 = vmatpush.bf16.msrb.mxu0 %v1220_v1  ;;  %v2620_v14 = vld [vmem:[%s3381_s6] ss:$0 sm:$0xff] }
 0x475   : > { %v1073_v11 = vunpack.c.l.b16 %v1039_v8  ;;  %v1042_v18 = vpack.c.bf16 %v1034_v55, %v1034_v55 }
 0x476   : > { %v1125_v25 = vunpack.c.l.b16 %v1043_v15 }
 0x477   : > { %v1074_v13 = vpack.c.b16 %v1073_v11, %v1072_v10  ;;  %v1124_v28 = vunpack.c.l.b16 %v1042_v18 }
 0x479   : > { %2448 = vmatmul.msk.bf16.vlgmr.msrb.gmra.mxu3 %vm623_vm0, %v1074_v13  ;;  %v1126_v29 = vpack.c.b16 %v1125_v25, %v1124_v28 }
 0x47c   : > { %v832_v20 = vpop.permute.xlu0 %831 }
 0x47d   : > { %v1127_v23 = vunpack.c.l.b16 %v832_v20 }
 0x47f   : > { %v1129_v26 = vpack.c.b16 %v1128_v22, %v1127_v23 }
 0x481   : > { %1141 = vmatpush.bf16.msra.mxu1 %v1129_v26 }
 0x484   : > { %2450 = vmatmul.msk.bf16.vlgmr.msra.gmra.mxu1 %vm623_vm0, %v1126_v29 }
 0x485   : > { %1254 = vmatpush.bf16.msrb.mxu1 %v1245_v36 }
 0x4ec   : > { %v1117_v35 = vpop.f32.mrf.mxu0 }
 0x4ed   : > { %v1152_v38 = vpack.c.bf16 %v1117_v35, %v1117_v35  ;;  %v2791_v35 = vmov 32.0  }
 0x4ee   : > { %2680 = vrcp.f32 %v2791_v35  ;;  %v2624_v35 = vld [vmem:[%s3387_s12] ss:$0 sm:$0xff] }
 0x4ef   : > { %v1213_v42 = vunpack.c.l.b16 %v1152_v38 }
 0x4f2   : > { %v1065_v37 = vpop.f32.mrf.mxu2 }
 0x4f3   : > { %v1148_v44 = vpack.c.bf16 %v1065_v37, %v1065_v37 }
 0x4f4   : > { %v1119_v39 = vpop.f32.mrf.mxu0  ;;  %v2681_v36 = vpop.eup %2680 }
 0x4f5   : > { %v1153_v40 = vpack.c.bf16 %v1119_v39, %v1119_v39  ;;  %v1162_v47 = vunpack.c.l.b16 %v1148_v44  ;;  %v1292_v37 = vmul.f32 32.0, %v2681_v36  ;;  %vm1296_vm3 = vweird.f32 %v2681_v36 }
 0x4f7   : > { %v1214_v43 = vunpack.c.l.b16 %v1153_v40 }
 0x4f9   : > { %v1215_v27 = vpack.c.b16 %v1214_v43, %v1213_v42 }
 0x4fa   : > { %v1067_v45 = vpop.f32.mrf.mxu2 }
 0x4fb   : > { %v1149_v24 = vpack.c.bf16 %v1067_v45, %v1067_v45  ;;  %2453 = vmatmul.msk.bf16.vlgmr.msrb.gmra.mxu0 %vm841_vm1, %v1215_v27 }
 0x4fc   : > { %v1091_v46 = vpop.f32.mrf.mxu3 }
 0x4fd   : > { %v1163_v49 = vunpack.c.l.b16 %v1149_v24  ;;  %v1150_v52 = vpack.c.bf16 %v1091_v46, %v1091_v46 }
 0x4ff   : > { %v1164_v50 = vpack.c.b16 %v1163_v49, %v1162_v47  ;;  %v1188_v56 = vunpack.c.l.b16 %v1150_v52 }
 0x501   : > { %v1143_v51 = vpop.f32.mrf.mxu1  ;;  %2451 = vmatmul.msk.bf16.vlgmr.msra.gmra.mxu2 %vm841_vm1, %v1164_v50  ;;  %v2569_v50 = vld [vmem:[#allocation2 + $0x8] sm:$0xff] }
 0x502   : > { %v1154_v58 = vpack.c.bf16 %v1143_v51, %v1143_v51  ;;  %1376 = vmatpush.bf16.msrb.mxu2 %v2569_v50 }
 0x504   : > { %v1093_v53 = vpop.f32.mrf.mxu3  ;;  %v1238_v63 = vunpack.c.l.b16 %v1154_v58 }
 0x505   : > { %v1151_v54 = vpack.c.bf16 %v1093_v53, %v1093_v53  ;;  %v2568_v53 = vld [vmem:[#allocation2] sm:$0xff] }
 0x506   : > { %1377 = vmatpush.bf16.msrb.mxu2 %v2568_v53  ;;  %v2575_v53 = vld [vmem:[%s3419_s2 + $0x18] sm:$0xff] }
 0x507   : > { %v1189_v57 = vunpack.c.l.b16 %v1151_v54  ;;  %1531 = vmatpush.bf16.msra.mxu0 %v2575_v53 }
 0x509   : > { %v1190_v59 = vpack.c.b16 %v1189_v57, %v1188_v56  ;;  %v1145_v60 = vpop.f32.mrf.mxu1 }
 0x50a   : > { %v1155_v61 = vpack.c.bf16 %v1145_v60, %v1145_v60 }
 0x50b   : > { %2452 = vmatmul.msk.bf16.vlgmr.msra.gmra.mxu3 %vm841_vm1, %v1190_v59 }
 0x50c   : > { %v1239_v62 = vunpack.c.l.b16 %v1155_v61 }
 0x50e   : > { %v1240_v2 = vpack.c.b16 %v1239_v62, %v1238_v63 }
 0x510   : > { %2454 = vmatmul.msk.bf16.vlgmr.msrb.gmra.mxu1 %vm841_vm1, %v1240_v2 }
 0x578   : > { %v1231_v4 = vpop.f32.mrf.mxu0 }
 0x579   : > { %v1264_v10 = vsel %vm769_vm15, %v1231_v4, 0.0 }
 0x580   : > { %v1233_v16 = vpop.f32.mrf.mxu0 }
 0x581   : > { %v1271_v29 = vsel %vm769_vm15, %v1233_v16, 0.0 }
 0x584   : > { %v1181_v3 = vpop.f32.mrf.mxu2 }
 0x585   : > { %v1261_v7 = vsel %vm769_vm15, %v1181_v3, 0.0 }
 0x58c   : > { %v1183_v55 = vpop.f32.mrf.mxu2 }
 0x58d   : > { %v1256_v5 = vpop.f32.mrf.mxu1  ;;  %v1268_v22 = vsel %vm769_vm15, %v1183_v55, 0.0 }
 0x58e   : > { %v1206_v6 = vpop.f32.mrf.mxu3  ;;  %v1266_v13 = vsel %vm769_vm15, %v1256_v5, 0.0 }
 0x58f   : > { %v1262_v8 = vsel %vm769_vm15, %v1206_v6, 0.0 }
 0x590   : > { %v1263_v9 = vadd.f32 %v1262_v8, %v1261_v7 }
 0x592   : > { %v1265_v11 = vadd.f32 %v1264_v10, %v1263_v9  ;;  %v2621_v9 = vld [vmem:[%s3382_s7] ss:$0 sm:$0xff] }
 0x594   : > { %v1267_v15 = vadd.f32 %v1266_v13, %v1265_v11  ;;  %v2622_v13 = vld [vmem:[%s3383_s8] ss:$0 sm:$0xff] }
 0x595   : > { %v1258_v25 = vpop.f32.mrf.mxu1 }
 0x596   : > { %v1208_v18 = vpop.f32.mrf.mxu3  ;;  %v1279_v20 = vadd.f32 %v2620_v14, %v1267_v15  ;;  %v1273_v30 = vsel %vm769_vm15, %v1258_v25, 0.0  ;;  %v2572_v25 = vld [vmem:[%s3386_s11 + $0x10] sm:$0xff] }
 0x597   : > { %v1269_v23 = vsel %vm769_vm15, %v1208_v18, 0.0 }
 0x598   : > { %v1270_v26 = vadd.f32 %v1269_v23, %v1268_v22  ;;  %v1281_v28 = vadd.f32 %v1279_v20, %v2963_v0  ;;  %v1293_v0 = vsub.f32 1.0, %v1292_v37  ;;  %v2573_v23 = vld [vmem:[%s3386_s11 + $0x18] sm:$0xff] }
 0x599   : > { %1431 = vmatpush.bf16.msrb.mxu3 %v2573_v23 }
 0x59a   : > { %v1272_v21 = vadd.f32 %v1271_v29, %v1270_v26  ;;  %v1285_v1 = vsel %vm769_vm15, %v1281_v28, 0.0  ;;  %v1294_v38 = vmul.f32 %v2681_v36, %v1293_v0  ;;  %v2571_v26 = vld [vmem:[%s3386_s11 + $0x8] sm:$0xff] }
 0x59b   : > { %1286 = vadd.xlane.f32.xlu0 %v1285_v1 }
 0x59c   : > { %v1274_v31 = vadd.f32 %v1273_v30, %v1272_v21  ;;  %v1295_v39 = vadd.f32 %v2681_v36, %v1294_v38  ;;  %v2623_v21 = vld [vmem:[%s3385_s10] ss:$0 sm:$0xff] }
 0x59d   : > { %1432 = vmatpush.bf16.msrb.mxu3 %v2572_v25 }
 0x59e   : > { %v1280_v32 = vadd.f32 %v2620_v14, %v1274_v31  ;;  %v3098_v40 = vsel %vm1296_vm3, %v2681_v36, %v1295_v39 }
 0x5a0   : > { %v1282_v33 = vadd.f32 %v1280_v32, %v2965_v19 }
 0x5a1   : > { %1433 = vmatpush.bf16.msrb.mxu3 %v2571_v26 }
 0x5a2   : > { %v1288_v34 = vsel %vm769_vm15, %v1282_v33, 0.0 }
 0x5a3   : > { %1289 = vadd.xlane.f32.xlu2 %v1288_v34 }
 0x60e   : > { %v1287_v42 = vpop.xlane.xlu0 %1286 }
 0x60f   : > { %v1298_v43 = vmul.f32 %v3098_v40, %v1287_v42 }
 0x611   : > { %v1300_v44 = vsub.f32 %v1281_v28, %v1298_v43  ;;  %v2570_v28 = vld [vmem:[%s3386_s11] sm:$0xff] }
 0x612   : > { %1434 = vmatpush.bf16.msrb.mxu3 %v2570_v28  ;;  %v2627_v28 = vld [vmem:[%s3379_s4 + $0x1] ss:$0 sm:$0xff] }
 0x613   : > { %v1302_v27 = vmul.f32 %v1300_v44, %v1300_v44 }
 0x615   : > { %v1304_v19 = vsel %vm769_vm15, %v1302_v27, 0.0 }
 0x616   : > { %1305 = vadd.xlane.f32.xlu1 %v1304_v19  ;;  %v1290_v45 = vpop.xlane.xlu2 %1289 }
 0x617   : > { %v1299_v24 = vmul.f32 %v3098_v40, %v1290_v45 }
 0x619   : > { %v1301_v46 = vsub.f32 %v1282_v33, %v1299_v24 }
 0x61b   : > { %v1303_v47 = vmul.f32 %v1301_v46, %v1301_v46 }
 0x61d   : > { %v1307_v49 = vsel %vm769_vm15, %v1303_v47, 0.0 }
 0x61e   : > { %1308 = vadd.xlane.f32.xlu0 %v1307_v49 }
 0x689   : > { %v1306_v51 = vpop.xlane.xlu1 %1305 }
 0x68a   : > { %v1310_v52 = vmul.f32 %v1306_v51, %v3098_v40 }
 0x68c   : > { %v1312_v54 = vadd.f32 1e-05, %v1310_v52 }
 0x68e   : > { %2682 = vrsqrt.f32 %v1312_v54  ;;  %vm1320_vm5 = vweird.f32 %v1312_v54 }
 0x691   : > { %v1309_v56 = vpop.xlane.xlu0 %1308 }
 0x692   : > { %v1311_v57 = vmul.f32 %v1309_v56, %v3098_v40 }
 0x694   : > { %v2683_v58 = vpop.eup %2682  ;;  %v1313_v59 = vadd.f32 1e-05, %v1311_v57  ;;  %v2574_v57 = vld [vmem:[%s3419_s2 + $0x10] sm:$0xff] }
 0x695   : > { %v1315_v60 = vmul.f32 %v2683_v58, %v1312_v54  ;;  %vm1321_vm4 = vweird.f32 %v2683_v58  ;;  %1532 = vmatpush.bf16.msra.mxu0 %v2574_v57 }
 0x696   : > { %2684 = vrsqrt.f32 %v1313_v59  ;;  %vm1322_vm6 = vmor %vm1320_vm5, %vm1321_vm4  ;;  %vm1330_vm8 = vweird.f32 %v1313_v59 }
 0x697   : > { %v1316_v61 = vmul.f32 %v2683_v58, %v1315_v60 }
 0x699   : > { %v1317_v63 = vmul.f32 0.5, %v1316_v61 }
 0x69b   : > { %v1318_v62 = vsub.f32 1.5, %v1317_v63 }
 0x69c   : > { %v2685_v2 = vpop.eup %2684 }
 0x69d   : > { %v1319_v3 = vmul.f32 %v2683_v58, %v1318_v62  ;;  %v1325_v4 = vmul.f32 %v2685_v2, %v1313_v59  ;;  %vm1331_vm7 = vweird.f32 %v2685_v2 }
 0x69e   : > { %vm1332_vm9 = vmor %vm1330_vm8, %vm1331_vm7 }
 0x69f   : > { %v1326_v5 = vmul.f32 %v2685_v2, %v1325_v4  ;;  %v1323_v6 = vsel %vm1322_vm6, %v2683_v58, %v1319_v3 }
 0x6a0   : > { %v1334_v10 = vmul.f32 %v1323_v6, %v1300_v44 }
 0x6a1   : > { %v1327_v7 = vmul.f32 0.5, %v1326_v5 }
 0x6a2   : > { %v1339_v55 = vmul.f32 %v2621_v9, %v1334_v10 }
 0x6a3   : > { %v1328_v8 = vsub.f32 1.5, %v1327_v7 }
 0x6a4   : > { %v1344_v18 = vadd.f32 %v2622_v13, %v1339_v55 }
 0x6a5   : > { %v1329_v11 = vmul.f32 %v2685_v2, %v1328_v8 }
 0x6a7   : > { %v1333_v14 = vsel %vm1332_vm9, %v2685_v2, %v1329_v11 }
 0x6a8   : > { %v1335_v15 = vmul.f32 %v1333_v14, %v1301_v46  ;;  %v2625_v14 = vld [vmem:[%s3388_s13] ss:$0 sm:$0xff] }
 0x6aa   : > { %v1340_v16 = vmul.f32 %v2621_v9, %v1335_v15 }
 0x6ac   : > { %v1345_v20 = vadd.f32 %v2622_v13, %v1340_v16  ;;  %v2626_v16 = vld [vmem:[%s3389_s14] ss:$0 sm:$0xff] }
 0x6ae   : > { %v1346_v22 = vpack.c.bf16 %v1345_v20, %v1344_v18 }
 0x6b0   : > { %2463 = vmatmul.msk.bf16.vlgmr.msrb.gmra.mxu2 %vm769_vm15, %v1346_v22 }
 0x733   : > { %v1379_v29 = vpop.f32.mrf.mxu2 }
 0x734   : > { %v1380_v1 = vadd.f32 %v2623_v21, %v1379_v29 }
 0x736   : > { %v1384_v32 = vmax.f32 %v1380_v1, 0.0 }
 0x73b   : > { %v1381_v30 = vpop.f32.mrf.mxu2 }
 0x73c   : > { %v1382_v31 = vadd.f32 %v2623_v21, %v1381_v30 }
 0x73e   : > { %v1385_v33 = vmax.f32 %v1382_v31, 0.0 }
 0x740   : > { %v1386_v34 = vpack.c.bf16 %v1385_v33, %v1384_v32 }
 0x742   : > { %2480 = vmatmul.msk.bf16.vlgmr.msrb.gmra.mxu3 %vm1423_vm10, %v1386_v34 }
 0x7c5   : > { %v1436_v36 = vpop.f32.mrf.mxu3 }
 0x7c6   : > { %v1437_v37 = vadd.f32 %v2624_v35, %v1436_v36 }
 0x7c8   : > { %v1441_v0 = vadd.f32 %v1437_v37, %v1344_v18 }
 0x7ca   : > { %v1445_v38 = vsel %vm769_vm15, %v1441_v0, 0.0 }
 0x7cb   : > { %1446 = vadd.xlane.f32.xlu2 %v1445_v38 }
 0x7cd   : > { %v1438_v39 = vpop.f32.mrf.mxu3 }
 0x7ce   : > { %v1439_v42 = vadd.f32 %v2624_v35, %v1438_v39 }
 0x7d0   : > { %v1442_v43 = vadd.f32 %v1439_v42, %v1345_v20 }
 0x7d2   : > { %v1448_v44 = vsel %vm769_vm15, %v1442_v43, 0.0 }
 0x7d3   : > { %1449 = vadd.xlane.f32.xlu1 %v1448_v44 }
 0x83e   : > { %v1447_v27 = vpop.xlane.xlu2 %1446 }
 0x83f   : > { %v1451_v19 = vmul.f32 %v1447_v27, %v3098_v40 }
 0x841   : > { %v1453_v45 = vsub.f32 %v1441_v0, %v1451_v19 }
 0x843   : > { %v1455_v24 = vmul.f32 %v1453_v45, %v1453_v45 }
 0x845   : > { %v1457_v46 = vsel %vm769_vm15, %v1455_v24, 0.0 }
 0x846   : > { %v1450_v47 = vpop.xlane.xlu1 %1449  ;;  %1458 = vadd.xlane.f32.xlu0 %v1457_v46 }
 0x847   : > { %v1452_v49 = vmul.f32 %v1450_v47, %v3098_v40 }
 0x849   : > { %v1454_v50 = vsub.f32 %v1442_v43, %v1452_v49 }
 0x84b   : > { %v1456_v51 = vmul.f32 %v1454_v50, %v1454_v50 }
 0x84d   : > { %v1460_v52 = vsel %vm769_vm15, %v1456_v51, 0.0 }
 0x84e   : > { %1461 = vadd.xlane.f32.xlu2 %v1460_v52 }
 0x8b9   : > { %v1459_v54 = vpop.xlane.xlu0 %1458 }
 0x8ba   : > { %v1463_v56 = vmul.f32 %v1459_v54, %v3098_v40 }
 0x8bc   : > { %v1465_v58 = vadd.f32 1e-05, %v1463_v56 }
 0x8be   : > { %2686 = vrsqrt.f32 %v1465_v58  ;;  %vm1473_vm12 = vweird.f32 %v1465_v58 }
 0x8c1   : > { %v1462_v59 = vpop.xlane.xlu2 %1461 }
 0x8c2   : > { %v1464_v60 = vmul.f32 %v1462_v59, %v3098_v40 }
 0x8c4   : > { %v2687_v61 = vpop.eup %2686  ;;  %v1466_v63 = vadd.f32 1e-05, %v1464_v60 }
 0x8c5   : > { %v1468_v62 = vmul.f32 %v2687_v61, %v1465_v58  ;;  %vm1474_vm11 = vweird.f32 %v2687_v61 }
 0x8c6   : > { %2688 = vrsqrt.f32 %v1466_v63  ;;  %vm1475_vm13 = vmor %vm1473_vm12, %vm1474_vm11  ;;  %vm1483_vm3 = vweird.f32 %v1466_v63 }
 0x8c7   : > { %v1469_v2 = vmul.f32 %v2687_v61, %v1468_v62 }
 0x8c9   : > { %v1470_v3 = vmul.f32 0.5, %v1469_v2 }
 0x8cb   : > { %v1471_v4 = vsub.f32 1.5, %v1470_v3 }
 0x8cc   : > { %v2689_v5 = vpop.eup %2688 }
 0x8cd   : > { %v1472_v6 = vmul.f32 %v2687_v61, %v1471_v4  ;;  %v1478_v7 = vmul.f32 %v2689_v5, %v1466_v63  ;;  %vm1484_vm14 = vweird.f32 %v2689_v5 }
 0x8ce   : > { %vm1485_vm4 = vmor %vm1483_vm3, %vm1484_vm14 }
 0x8cf   : > { %v1479_v8 = vmul.f32 %v2689_v5, %v1478_v7  ;;  %v1476_v9 = vsel %vm1475_vm13, %v2687_v61, %v1472_v6 }
 0x8d0   : > { %v1487_v13 = vmul.f32 %v1476_v9, %v1453_v45 }
 0x8d1   : > { %v1480_v10 = vmul.f32 0.5, %v1479_v8 }
 0x8d2   : > { %v1492_v18 = vmul.f32 %v2625_v14, %v1487_v13 }
 0x8d3   : > { %v1481_v11 = vsub.f32 1.5, %v1480_v10 }
 0x8d4   : > { %v3152_v23 = vadd.f32 %v2626_v16, %v1492_v18 }
 0x8d5   : > { %v1482_v55 = vmul.f32 %v2689_v5, %v1481_v11 }
 0x8d7   : > { %v1486_v15 = vsel %vm1485_vm4, %v2689_v5, %v1482_v55 }
 0x8d8   : > { %v1488_v20 = vmul.f32 %v1486_v15, %v1454_v50 }
 0x8da   : > { %v1493_v22 = vmul.f32 %v2625_v14, %v1488_v20 }
 0x8dc   : > { %v3154_v25 = vadd.f32 %v2626_v16, %v1493_v22 }
 0x8de   : > { %v1499_v26 = vpack.c.bf16 %v3154_v25, %v3152_v23 }
 0x8e0   : > { %2494 = vmatmul.msk.bf16.vlgmr.msra.gmra.mxu0 %vm769_vm15, %v1499_v26 }
 0x95d   : > { %v1534_v29 = vpop.f32.mrf.mxu0 }
 0x95e   : > { %v1535_v21 = vadd.f32 %v2627_v28, %v1534_v29 }
 0x960   : > { %v3162_v1 = vpack.c.bf16 %v1535_v21, %v1535_v21 }
 0x962   : > { %1563 = vrot.lane.b32.xlu2 %v3162_v1, %s2782_s21  ;;  %1559 = vrot.lane.b32.xlu1 %v3162_v1, %s2780_s30  ;;  %v1587_v10 = vunpack.c.l.b16 %v3162_v1 }
 0x965   : > { %v1536_v30 = vpop.f32.mrf.mxu0 }
 0x966   : > { %v1537_v31 = vadd.f32 %v2627_v28, %v1536_v30 }
 0x968   : > { %v3168_v32 = vpack.c.bf16 %v1537_v31, %v1537_v31 }
 0x96a   : > { %1561 = vrot.lane.b32.xlu0 %v3168_v32, %s2780_s30  ;;  %1545 = vrot.lane.b32.xlu2 %v3168_v32, %s2785_s24  ;;  %s3424_s30 = smov 104   ;;  %v1588_v6 = vunpack.c.l.b16 %v3168_v32 }
 0x96b   : > { %1543 = vrot.lane.b32.xlu1 %v3162_v1, %s2785_s24  ;;  %s3426_s24 = smov 56  }
 0x96c   : > { %v1589_v14 = vpack.c.b16 %v1588_v6, %v1587_v10 }
 0x972   : > { %1565 = vrot.lane.b32.xlu0 %v3168_v32, %s2782_s21  ;;  %1555 = vrot.lane.b32.xlu2 %v3162_v1, %s3421_s22  ;;  %s3425_s21 = smov 48  }
 0x973   : > { %1549 = vrot.lane.b32.xlu1 %v3168_v32, %s3422_s23 }
 0x97a   : > { %1547 = vrot.lane.b32.xlu0 %v3162_v1, %s3422_s23  ;;  %1569 = vrot.lane.b32.xlu2 %v3168_v32, %s3423_s28 }
 0x97b   : > { %1567 = vrot.lane.b32.xlu1 %v3162_v1, %s3423_s28 }
 0x982   : > { %1557 = vrot.lane.b32.xlu0 %v3168_v32, %s3421_s22  ;;  %s3429_s22 = sshll.u32 %s3431_s1, 4 }
 0x983   : > { %1553 = vrot.lane.b32.xlu1 %v3168_v32, %s3424_s30 }
 0x98a   : > { %1551 = vrot.lane.b32.xlu0 %v3162_v1, %s3424_s30  ;;  %s619_s30 = scalar_lea.vmem %s3394_s19, %s3429_s22 }
 0x9bc   : > { %v1564_v33 = vpop.permute.xlu2 %1563 }
 0x9bd   : > { %v1642_v19 = vunpack.c.l.b16 %v1564_v33 }
 0x9c4   : > { %v1546_v35 = vpop.permute.xlu2 %1545 }
 0x9c5   : > { %v1614_v45 = vunpack.c.l.b16 %v1546_v35 }
 0x9cc   : > { %v1556_v42 = vpop.permute.xlu2 %1555 }
 0x9cd   : > { %v1590_v62 = vunpack.c.l.b16 %v1556_v42 }
 0x9d4   : > { %v1560_v34 = vpop.permute.xlu1 %1559  ;;  %v1570_v51 = vpop.permute.xlu2 %1569 }
 0x9d5   : > { %v1616_v37 = vunpack.c.l.b16 %v1560_v34  ;;  %v1669_v57 = vunpack.c.l.b16 %v1570_v51 }
 0x9dc   : > { %v1562_v36 = vpop.permute.xlu0 %1561 }
 0x9dd   : > { %v1617_v0 = vunpack.c.l.b16 %v1562_v36  ;;  %v1544_v38 = vpop.permute.xlu1 %1543 }
 0x9de   : > { %v1613_v44 = vunpack.c.l.b16 %v1544_v38 }
 0x9df   : > { %v1618_v39 = vpack.c.b16 %v1617_v0, %v1616_v37 }
 0x9e0   : > { %v1615_v47 = vpack.c.b16 %v1614_v45, %v1613_v44 }
 0x9e1   : > { %v1623_v43 = vsel %vm841_vm1, %v1618_v39, 0 }
 0x9e2   : > { %1632 = vmatpush.bf16.xpose.msra.mxu2 %v1623_v43 }
 0x9e4   : > { %v1566_v27 = vpop.permute.xlu0 %1565 }
 0x9e5   : > { %v1643_v24 = vunpack.c.l.b16 %v1566_v27  ;;  %v1550_v46 = vpop.permute.xlu1 %1549 }
 0x9e6   : > { %v1640_v53 = vunpack.c.l.b16 %v1550_v46 }
 0x9e7   : > { %v1644_v49 = vpack.c.b16 %v1643_v24, %v1642_v19 }
 0x9e9   : > { %2496 = vmatmul.msk.bf16.vlgmr.msra.gmra.mxu2 %vm841_vm1, %v1615_v47  ;;  %v1649_v50 = vsel %vm841_vm1, %v1644_v49, 0 }
 0x9ea   : > { %1658 = vmatpush.bf16.xpose.msra.mxu3 %v1649_v50 }
 0x9ec   : > { %v1548_v52 = vpop.permute.xlu0 %1547 }
 0x9ed   : > { %v1639_v54 = vunpack.c.l.b16 %v1548_v52  ;;  %v1568_v56 = vpop.permute.xlu1 %1567 }
 0x9ee   : > { %v1668_v58 = vunpack.c.l.b16 %v1568_v56 }
 0x9ef   : > { %v1641_v59 = vpack.c.b16 %v1640_v53, %v1639_v54 }
 0x9f0   : > { %v1670_v60 = vpack.c.b16 %v1669_v57, %v1668_v58 }
 0x9f1   : > { %2497 = vmatmul.msk.bf16.vlgmr.msra.gmra.mxu3 %vm841_vm1, %v1641_v59 }
 0x9f2   : > { %v1675_v61 = vsel %vm841_vm1, %v1670_v60, 0 }
 0x9f3   : > { %1684 = vmatpush.bf16.xpose.msrb.mxu0 %v1675_v61 }
 0x9f4   : > { %v1558_v63 = vpop.permute.xlu0 %1557 }
 0x9f5   : > { %v1591_v2 = vunpack.c.l.b16 %v1558_v63  ;;  %v1554_v5 = vpop.permute.xlu1 %1553 }
 0x9f6   : > { %v1666_v8 = vunpack.c.l.b16 %v1554_v5 }
 0x9f7   : > { %v1592_v3 = vpack.c.b16 %v1591_v2, %v1590_v62 }
 0x9f9   : > { %v1597_v4 = vsel %vm841_vm1, %v1592_v3, 0 }
 0x9fa   : > { %1606 = vmatpush.bf16.xpose.msra.mxu1 %v1597_v4 }
 0x9fc   : > { %v1552_v7 = vpop.permute.xlu0 %1551 }
 0x9fd   : > { %v1665_v9 = vunpack.c.l.b16 %v1552_v7 }
 0x9ff   : > { %v1667_v11 = vpack.c.b16 %v1666_v8, %v1665_v9 }
 0xa01   : > { %2495 = vmatmul.msk.bf16.vlgmr.msra.gmra.mxu1 %vm841_vm1, %v1589_v14  ;;  %2498 = vmatmul.msk.bf16.vlgmr.msrb.gmra.mxu0 %vm841_vm1, %v1667_v11 }
 0xa6c   : > { %v1634_v26 = vpop.f32.mrf.mxu2 }
 0xa6d   : > { %v1693_v21 = vmul.f32 0.35355338, %v1634_v26 }
 0xa6f   : > { %v1705_v35 = vsel %vm623_vm0, %v1693_v21, -inf }
 0xa74   : > { %v1660_v13 = vpop.f32.mrf.mxu3  ;;  %v1636_v0 = vpop.f32.mrf.mxu2 }
 0xa75   : > { %v1695_v55 = vmul.f32 0.35355338, %v1660_v13  ;;  %v1694_v39 = vmul.f32 0.35355338, %v1636_v0 }
 0xa77   : > { %v1711_v15 = vsel %vm623_vm0, %v1695_v55, -inf  ;;  %v1708_v44 = vsel %vm623_vm0, %v1694_v39, -inf }
 0xa78   : > { %1712 = vmax.xlane.f32.xlu1 %v1711_v15 }
 0xa7c   : > { %v1662_v38 = vpop.f32.mrf.mxu3 }
 0xa7d   : > { %v1696_v42 = vmul.f32 0.35355338, %v1662_v38 }
 0xa7e   : > { %v1608_v16 = vpop.f32.mrf.mxu1  ;;  %v1686_v18 = vpop.f32.mrf.mxu0 }
 0xa7f   : > { %v1691_v20 = vmul.f32 0.35355338, %v1608_v16  ;;  %v1697_v22 = vmul.f32 0.35355338, %v1686_v18  ;;  %v1714_v43 = vsel %vm623_vm0, %v1696_v42, -inf }
 0xa81   : > { %v1717_v28 = vsel %vm623_vm0, %v1697_v22, -inf  ;;  %v1699_v29 = vsel %vm623_vm0, %v1691_v20, -inf }
 0xa82   : > { %1718 = vmax.xlane.f32.xlu2 %v1717_v28  ;;  %1700 = vmax.xlane.f32.xlu0 %v1699_v29 }
 0xa86   : > { %v1610_v30 = vpop.f32.mrf.mxu1  ;;  %v1688_v31 = vpop.f32.mrf.mxu0 }
 0xa87   : > { %v1692_v33 = vmul.f32 0.35355338, %v1610_v30  ;;  %v1698_v34 = vmul.f32 0.35355338, %v1688_v31 }
 0xa89   : > { %v1720_v36 = vsel %vm623_vm0, %v1698_v34, -inf  ;;  %v1702_v37 = vsel %vm623_vm0, %v1692_v33, -inf }
 0xa8a   : > { %1706 = vmax.xlane.f32.xlu2 %v1705_v35  ;;  %1721 = vmax.xlane.f32.xlu0 %v1720_v36 }
 0xa8b   : > { %1703 = vmax.xlane.f32.xlu1 %v1702_v37 }
 0xa92   : > { %1715 = vmax.xlane.f32.xlu2 %v1714_v43  ;;  %1709 = vmax.xlane.f32.xlu0 %v1708_v44 }
 0xaa4   : > { %1579 = vrot.lane.b32.xlu1 %v3162_v1, %s3425_s21 }
 0xaa6   : > { %1577 = vrot.lane.b32.xlu0 %v3168_v32, %s3426_s24 }
 0xaaa   : > { %1575 = vrot.lane.b32.xlu2 %v3162_v1, %s3426_s24 }
 0xaae   : > { %1581 = vrot.lane.b32.xlu0 %v3168_v32, %s3425_s21 }
 0xaeb   : > { %v1713_v27 = vpop.xlane.xlu1 %1712 }
 0xaec   : > { %v1727_v19 = vsub.f32 %v1695_v55, %v1713_v27 }
 0xaee   : > { %v1739_v45 = vmul.f32 1.442695, %v1727_v19 }
 0xaf0   : > { %2690 = vpow2.f32 %v1739_v45 }
 0xaf5   : > { %v1719_v24 = vpop.xlane.xlu2 %1718  ;;  %v1701_v46 = vpop.xlane.xlu0 %1700 }
 0xaf6   : > { %v3220_v47 = vpop.eup %2690  ;;  %v1729_v49 = vsub.f32 %v1697_v22, %v1719_v24  ;;  %v1723_v50 = vsub.f32 %v1691_v20, %v1701_v46 }
 0xaf7   : > { %v1759_v51 = vsel %vm623_vm0, %v3220_v47, 0.0 }
 0xaf8   : > { %v1743_v52 = vmul.f32 1.442695, %v1729_v49  ;;  %v1731_v53 = vmul.f32 1.442695, %v1723_v50  ;;  %1760 = vadd.xlane.f32.xlu0 %v1759_v51 }
 0xafa   : > { %2692 = vpow2.f32 %v1743_v52 }
 0xafb   : > { %2694 = vpow2.f32 %v1731_v53 }
 0xafd   : > { %v1707_v54 = vpop.xlane.xlu2 %1706  ;;  %v1722_v56 = vpop.xlane.xlu0 %1721 }
 0xafe   : > { %v1725_v57 = vsub.f32 %v1693_v21, %v1707_v54  ;;  %v1730_v58 = vsub.f32 %v1698_v34, %v1722_v56  ;;  %v1704_v59 = vpop.xlane.xlu1 %1703 }
 0xaff   : > { %v1724_v60 = vsub.f32 %v1692_v33, %v1704_v59 }
 0xb00   : > { %v3224_v61 = vpop.eup %2692  ;;  %v1735_v63 = vmul.f32 1.442695, %v1725_v57  ;;  %v1745_v62 = vmul.f32 1.442695, %v1730_v58 }
 0xb01   : > { %v3226_v2 = vpop.eup %2694  ;;  %v1733_v3 = vmul.f32 1.442695, %v1724_v60  ;;  %v1765_v4 = vsel %vm623_vm0, %v3224_v61, 0.0 }
 0xb02   : > { %2696 = vpow2.f32 %v1735_v63  ;;  %v1747_v5 = vsel %vm623_vm0, %v3226_v2, 0.0  ;;  %1766 = vadd.xlane.f32.xlu1 %v1765_v4 }
 0xb03   : > { %2698 = vpow2.f32 %v1745_v62  ;;  %1748 = vadd.xlane.f32.xlu2 %v1747_v5 }
 0xb04   : > { %2700 = vpow2.f32 %v1733_v3 }
 0xb05   : > { %v1716_v6 = vpop.xlane.xlu2 %1715  ;;  %v1710_v7 = vpop.xlane.xlu0 %1709 }
 0xb06   : > { %v1728_v8 = vsub.f32 %v1696_v42, %v1716_v6  ;;  %v1726_v9 = vsub.f32 %v1694_v39, %v1710_v7 }
 0xb08   : > { %v2697_v10 = vpop.eup %2696  ;;  %v1741_v11 = vmul.f32 1.442695, %v1728_v8  ;;  %v1737_v14 = vmul.f32 1.442695, %v1726_v9 }
 0xb09   : > { %v3232_v13 = vpop.eup %2698  ;;  %v1753_v55 = vsel %vm623_vm0, %v2697_v10, 0.0 }
 0xb0a   : > { %v2701_v15 = vpop.eup %2700  ;;  %2702 = vpow2.f32 %v1741_v11  ;;  %v1768_v16 = vsel %vm623_vm0, %v3232_v13, 0.0  ;;  %1754 = vadd.xlane.f32.xlu1 %v1753_v55 }
 0xb0b   : > { %2704 = vpow2.f32 %v1737_v14  ;;  %1769 = vadd.xlane.f32.xlu2 %v1768_v16  ;;  %v1750_v18 = vsel %vm623_vm0, %v2701_v15, 0.0 }
 0xb0c   : > { %1751 = vadd.xlane.f32.xlu0 %v1750_v18 }
 0xb0d   : > { %v1576_v29 = vpop.permute.xlu2 %1575 }
 0xb0e   : > { %v1826_v30 = vunpack.c.l.b16 %v1576_v29 }
 0xb10   : > { %v2703_v20 = vpop.eup %2702 }
 0xb11   : > { %v2705_v22 = vpop.eup %2704  ;;  %v1762_v26 = vsel %vm623_vm0, %v2703_v20, 0.0 }
 0xb12   : > { %v1756_v28 = vsel %vm623_vm0, %v2705_v22, 0.0  ;;  %1763 = vadd.xlane.f32.xlu1 %v1762_v26 }
 0xb13   : > { %1757 = vadd.xlane.f32.xlu2 %v1756_v28 }
 0xb16   : > { %v1580_v34 = vpop.permute.xlu1 %1579 }
 0xb17   : > { %v1852_v36 = vunpack.c.l.b16 %v1580_v34 }
 0xb18   : > { %v1578_v21 = vpop.permute.xlu0 %1577 }
 0xb19   : > { %v1827_v31 = vunpack.c.l.b16 %v1578_v21 }
 0xb1b   : > { %v1828_v33 = vpack.c.b16 %v1827_v31, %v1826_v30 }
 0xb1d   : > { %1840 = vmatpush.bf16.msrb.mxu2 %v1828_v33 }
 0xb20   : > { %1573 = vrot.lane.b32.xlu0 %v3168_v32, %s3427_s25  ;;  %v1582_v35 = vpop.permute.xlu0 %1581 }
 0xb21   : > { %v1853_v37 = vunpack.c.l.b16 %v1582_v35 }
 0xb23   : > { %v1854_v0 = vpack.c.b16 %v1853_v37, %v1852_v36 }
 0xb25   : > { %1866 = vmatpush.bf16.msrb.mxu3 %v1854_v0  ;;  %v2504_v0 = vld [vmem:[%s3380_s5 + $0x14] sm:$0xf] }
 0xb28   : > { %1585 = vrot.lane.b32.xlu0 %v3168_v32, %s3428_s29 }
 0xb2b   : > { %1571 = vrot.lane.b32.xlu2 %v3162_v1, %s3427_s25  ;;  %1583 = vrot.lane.b32.xlu1 %v3162_v1, %s3428_s29 }
 0xb6b   : > { %v1761_v42 = vpop.xlane.xlu0 %1760 }
 0xb6c   : > { %2706 = vrcp.f32 %v1761_v42 }
 0xb72   : > { %v2707_v45 = vpop.eup %2706 }
 0xb73   : > { %v1783_v49 = vmul.f32 %v2707_v45, %v3220_v47 }
 0xb75   : > { %v1767_v38 = vpop.xlane.xlu1 %1766  ;;  %v1791_v54 = vpack.c.bf16 %v1783_v49, %v1783_v49 }
 0xb76   : > { %v1749_v39 = vpop.xlane.xlu2 %1748 }
 0xb77   : > { %v1849_v4 = vunpack.c.l.b16 %v1791_v54 }
 0xb7d   : > { %v1755_v43 = vpop.xlane.xlu1 %1754 }
 0xb7e   : > { %v1770_v44 = vpop.xlane.xlu2 %1769  ;;  %2708 = vrcp.f32 %v1755_v43  ;;  %v2506_v43 = vld [vmem:[%s3380_s5 + $0x1c] sm:$0xf] }
 0xb7f   : > { %v1752_v27 = vpop.xlane.xlu0 %1751 }
 0xb80   : > { %2710 = vrcp.f32 %v1752_v27 }
 0xb81   : > { %2712 = vrcp.f32 %v1749_v39  ;;  %v1946_v39 = vsel %vm1168_vm2, %v2504_v0, 0 }
 0xb82   : > { %1955 = vmatpush.bf16.msra.mxu2 %v1946_v39 }
 0xb84   : > { %v2709_v32 = vpop.eup %2708 }
 0xb85   : > { %v1764_v19 = vpop.xlane.xlu1 %1763  ;;  %v1781_v1 = vmul.f32 %v2709_v32, %v2697_v10 }
 0xb86   : > { %v1758_v24 = vpop.xlane.xlu2 %1757  ;;  %2714 = vrcp.f32 %v1764_v19  ;;  %v2711_v46 = vpop.eup %2710 }
 0xb87   : > { %2716 = vrcp.f32 %v1758_v24  ;;  %v2713_v50 = vpop.eup %2712  ;;  %v1780_v52 = vmul.f32 %v2711_v46, %v2701_v15  ;;  %v1789_v58 = vpack.c.bf16 %v1781_v1, %v1781_v1 }
 0xb88   : > { %v1779_v57 = vmul.f32 %v2713_v50, %v3226_v2  ;;  %2718 = vrcp.f32 %v1770_v44  ;;  %v1996_v44 = vsel %vm1168_vm2, %v2506_v43, 0 }
 0xb89   : > { %2720 = vrcp.f32 %v1767_v38  ;;  %v1788_v63 = vpack.c.bf16 %v1780_v52, %v1780_v52  ;;  %v1823_v6 = vunpack.c.l.b16 %v1789_v58  ;;  %v2505_v38 = vld [vmem:[%s3380_s5 + $0x18] sm:$0xf] }
 0xb8a   : > { %v1787_v47 = vpack.c.bf16 %v1779_v57, %v1779_v57  ;;  %v1971_v42 = vsel %vm1168_vm2, %v2505_v38, 0 }
 0xb8b   : > { %v1798_v55 = vunpack.c.l.b16 %v1788_v63  ;;  %1980 = vmatpush.bf16.msra.mxu3 %v1971_v42 }
 0xb8c   : > { %v2715_v51 = vpop.eup %2714  ;;  %v1797_v18 = vunpack.c.l.b16 %v1787_v47 }
 0xb8d   : > { %v2717_v53 = vpop.eup %2716  ;;  %v1784_v56 = vmul.f32 %v2715_v51, %v2703_v20 }
 0xb8e   : > { %v1782_v59 = vmul.f32 %v2717_v53, %v2705_v22  ;;  %v1572_v3 = vpop.permute.xlu2 %1571  ;;  %v2719_v14 = vpop.eup %2718  ;;  %v1799_v22 = vpack.c.b16 %v1798_v55, %v1797_v18 }
 0xb8f   : > { %v1792_v60 = vpack.c.bf16 %v1784_v56, %v1784_v56  ;;  %v1800_v10 = vunpack.c.l.b16 %v1572_v3  ;;  %v2721_v16 = vpop.eup %2720  ;;  %v1786_v20 = vmul.f32 %v2719_v14, %v3232_v13  ;;  %v2503_v13 = vld [vmem:[%s3380_s5 + $0x10] sm:$0xf] }
 0xb90   : > { %v1790_v62 = vpack.c.bf16 %v1782_v59, %v1782_v59  ;;  %v1785_v26 = vmul.f32 %v2721_v16, %v3224_v61  ;;  %v1921_v61 = vsel %vm1168_vm2, %v2503_v13, 0 }
 0xb91   : > { %v1850_v5 = vunpack.c.l.b16 %v1792_v60  ;;  %v1794_v28 = vpack.c.bf16 %v1786_v20, %v1786_v20 }
 0xb92   : > { %v1824_v7 = vunpack.c.l.b16 %v1790_v62  ;;  %v1574_v8 = vpop.permute.xlu0 %1573  ;;  %v1793_v21 = vpack.c.bf16 %v1785_v26, %v1785_v26  ;;  %v2628_v26 = vld [vmem:[%s3381_s6 + $0x1] ss:$0 sm:$0xff] }
 0xb93   : > { %v1851_v9 = vpack.c.b16 %v1850_v5, %v1849_v4  ;;  %v1801_v11 = vunpack.c.l.b16 %v1574_v8  ;;  %v1876_v34 = vunpack.c.l.b16 %v1794_v28 }
 0xb94   : > { %v1825_v2 = vpack.c.b16 %v1824_v7, %v1823_v6  ;;  %v1875_v36 = vunpack.c.l.b16 %v1793_v21 }
 0xb95   : > { %v1802_v15 = vpack.c.b16 %v1801_v11, %v1800_v10  ;;  %2501 = vmatmul.msk.bf16.vlgmr.msrb.gmra.mxu3 %vm623_vm0, %v1851_v9 }
 0xb96   : > { %2500 = vmatmul.msk.bf16.vlgmr.msrb.gmra.mxu2 %vm623_vm0, %v1825_v2  ;;  %v1877_v37 = vpack.c.b16 %v1876_v34, %v1875_v36 }
 0xb97   : > { %1814 = vmatpush.bf16.msrb.mxu1 %v1802_v15 }
 0xb9a   : > { %2499 = vmatmul.msk.bf16.vlgmr.msrb.gmra.mxu1 %vm623_vm0, %v1799_v22  ;;  %v1586_v29 = vpop.permute.xlu0 %1585 }
 0xb9b   : > { %v1879_v31 = vunpack.c.l.b16 %v1586_v29  ;;  %1930 = vmatpush.bf16.msra.mxu1 %v1921_v61 }
 0xb9d   : > { %v1584_v30 = vpop.permute.xlu1 %1583 }
 0xb9e   : > { %v1878_v33 = vunpack.c.l.b16 %v1584_v30 }
 0xba0   : > { %v1880_v35 = vpack.c.b16 %v1879_v31, %v1878_v33 }
 0xba2   : > { %1892 = vmatpush.bf16.msra.mxu0 %v1880_v35 }
 0xba5   : > { %2502 = vmatmul.msk.bf16.vlgmr.msra.gmra.mxu0 %vm623_vm0, %v1877_v37 }
 0xba6   : > { %2005 = vmatpush.bf16.msrb.mxu0 %v1996_v44 }
 0xc17   : > { %v1816_v27 = vpop.f32.mrf.mxu1 }
 0xc18   : > { %v1868_v19 = vpop.f32.mrf.mxu3  ;;  %v1899_v24 = vpack.c.bf16 %v1816_v27, %v1816_v27 }
 0xc19   : > { %v1842_v45 = vpop.f32.mrf.mxu2  ;;  %v1903_v32 = vpack.c.bf16 %v1868_v19, %v1868_v19 }
 0xc1a   : > { %v1901_v49 = vpack.c.bf16 %v1842_v45, %v1842_v45  ;;  %v1914_v53 = vunpack.c.l.b16 %v1899_v24 }
 0xc1b   : > { %v1964_v58 = vunpack.c.l.b16 %v1903_v32 }
 0xc1c   : > { %v1939_v60 = vunpack.c.l.b16 %v1901_v49 }
 0xc1f   : > { %v1818_v46 = vpop.f32.mrf.mxu1 }
 0xc20   : > { %v1900_v1 = vpack.c.bf16 %v1818_v46, %v1818_v46  ;;  %v1870_v50 = vpop.f32.mrf.mxu3 }
 0xc21   : > { %v1844_v51 = vpop.f32.mrf.mxu2  ;;  %v1904_v52 = vpack.c.bf16 %v1870_v50, %v1870_v50 }
 0xc22   : > { %v1915_v54 = vunpack.c.l.b16 %v1900_v1  ;;  %v1902_v56 = vpack.c.bf16 %v1844_v51, %v1844_v51  ;;  %v1894_v57 = vpop.f32.mrf.mxu0 }
 0xc23   : > { %v1965_v59 = vunpack.c.l.b16 %v1904_v52  ;;  %v1905_v5 = vpack.c.bf16 %v1894_v57, %v1894_v57 }
 0xc24   : > { %v1916_v63 = vpack.c.b16 %v1915_v54, %v1914_v53  ;;  %v1940_v62 = vunpack.c.l.b16 %v1902_v56  ;;  %v2576_v54 = vld [vmem:[#allocation2 + $0x10] sm:$0xff] }
 0xc25   : > { %v1966_v3 = vpack.c.b16 %v1965_v59, %v1964_v58  ;;  %v1989_v7 = vunpack.c.l.b16 %v1905_v5 }
 0xc26   : > { %v1941_v4 = vpack.c.b16 %v1940_v62, %v1939_v60  ;;  %2507 = vmatmul.msk.bf16.vlgmr.msra.gmra.mxu1 %vm841_vm1, %v1916_v63 }
 0xc27   : > { %2509 = vmatmul.msk.bf16.vlgmr.msra.gmra.mxu3 %vm841_vm1, %v1966_v3 }
 0xc28   : > { %2508 = vmatmul.msk.bf16.vlgmr.msra.gmra.mxu2 %vm841_vm1, %v1941_v4 }
 0xc2a   : > { %v1896_v47 = vpop.f32.mrf.mxu0 }
 0xc2b   : > { %v1906_v6 = vpack.c.bf16 %v1896_v47, %v1896_v47 }
 0xc2d   : > { %v1990_v8 = vunpack.c.l.b16 %v1906_v6 }
 0xc2f   : > { %v1991_v9 = vpack.c.b16 %v1990_v8, %v1989_v7 }
 0xc31   : > { %2510 = vmatmul.msk.bf16.vlgmr.msrb.gmra.mxu0 %vm841_vm1, %v1991_v9 }
 0xca3   : > { %v1932_v10 = vpop.f32.mrf.mxu1 }
 0xca4   : > { %v2012_v55 = vsel %vm769_vm15, %v1932_v10, 0.0  ;;  %v2629_v10 = vld [vmem:[%s3382_s7 + $0x1] ss:$0 sm:$0xff] }
 0xcaa   : > { %v1982_v11 = vpop.f32.mrf.mxu3 }
 0xcab   : > { %v1957_v14 = vpop.f32.mrf.mxu2  ;;  %v2015_v16 = vsel %vm769_vm15, %v1982_v11, 0.0  ;;  %v1934_v28 = vpop.f32.mrf.mxu1 }
 0xcac   : > { %v2013_v2 = vsel %vm769_vm15, %v1957_v14, 0.0  ;;  %v2019_v33 = vsel %vm769_vm15, %v1934_v28, 0.0  ;;  %v2581_v28 = vld [vmem:[%s3386_s11 + $0x38] sm:$0xff] }
 0xcad   : > { %v2014_v15 = vadd.f32 %v2013_v2, %v2012_v55  ;;  %v2630_v2 = vld [vmem:[%s3383_s8 + $0x1] ss:$0 sm:$0xff]  ;;  %2181 = vmatpush.bf16.msrb.mxu2 %v2581_v28 }
 0xcae   : > { %v2007_v18 = vpop.f32.mrf.mxu0 }
 0xcaf   : > { %v2016_v20 = vadd.f32 %v2015_v16, %v2014_v15  ;;  %v2017_v22 = vsel %vm769_vm15, %v2007_v18, 0.0 }
 0xcb1   : > { %v2018_v29 = vadd.f32 %v2017_v22, %v2016_v20 }
 0xcb2   : > { %v1984_v31 = vpop.f32.mrf.mxu3 }
 0xcb3   : > { %v2031_v21 = vadd.f32 %v2628_v26, %v2018_v29  ;;  %v1959_v30 = vpop.f32.mrf.mxu2  ;;  %v2022_v37 = vsel %vm769_vm15, %v1984_v31, 0.0  ;;  %v2580_v29 = vld [vmem:[%s3386_s11 + $0x30] sm:$0xff] }
 0xcb4   : > { %v2020_v34 = vsel %vm769_vm15, %v1959_v30, 0.0  ;;  %2182 = vmatpush.bf16.msrb.mxu2 %v2580_v29  ;;  %v2578_v30 = vld [vmem:[%s3386_s11 + $0x20] sm:$0xff] }
 0xcb5   : > { %v2021_v35 = vadd.f32 %v2020_v34, %v2019_v33  ;;  %v2033_v36 = vadd.f32 %v2031_v21, %v3152_v23  ;;  %v2579_v21 = vld [vmem:[%s3386_s11 + $0x28] sm:$0xff]  ;;  %v2631_v33 = vld [vmem:[%s3385_s10 + $0x1] ss:$0 sm:$0xff] }
 0xcb6   : > { %v2009_v13 = vpop.f32.mrf.mxu0 }
 0xcb7   : > { %v2023_v61 = vadd.f32 %v2022_v37, %v2021_v35  ;;  %v2024_v0 = vsel %vm769_vm15, %v2009_v13, 0.0  ;;  %v2039_v38 = vsel %vm769_vm15, %v2033_v36, 0.0 }
 0xcb8   : > { %2040 = vadd.xlane.f32.xlu2 %v2039_v38  ;;  %2183 = vmatpush.bf16.msrb.mxu2 %v2579_v21 }
 0xcb9   : > { %v2025_v39 = vadd.f32 %v2024_v0, %v2023_v61  ;;  %v2632_v0 = vld [vmem:[%s3387_s12 + $0x1] ss:$0 sm:$0xff] }
 0xcbb   : > { %v2032_v42 = vadd.f32 %v2628_v26, %v2025_v39 }
 0xcbc   : > { %2184 = vmatpush.bf16.msrb.mxu2 %v2578_v30 }
 0xcbd   : > { %v2034_v43 = vadd.f32 %v2032_v42, %v3154_v25  ;;  %v2577_v25 = vld [vmem:[#allocation2 + $0x18] sm:$0xff] }
 0xcbe   : > { %2125 = vmatpush.bf16.msrb.mxu1 %v2577_v25 }
 0xcbf   : > { %v2042_v44 = vsel %vm769_vm15, %v2034_v43, 0.0 }
 0xcc0   : > { %2043 = vadd.xlane.f32.xlu1 %v2042_v44 }
 0xcc2   : > { %2126 = vmatpush.bf16.msrb.mxu1 %v2576_v54 }
 0xd2b   : > { %v2041_v27 = vpop.xlane.xlu2 %2040 }
 0xd2c   : > { %v2045_v19 = vmul.f32 %v2041_v27, %v3098_v40 }
 0xd2e   : > { %v2047_v23 = vsub.f32 %v2033_v36, %v2045_v19 }
 0xd30   : > { %v2049_v45 = vmul.f32 %v2047_v23, %v2047_v23 }
 0xd32   : > { %v2051_v24 = vsel %vm769_vm15, %v2049_v45, 0.0 }
 0xd33   : > { %2052 = vadd.xlane.f32.xlu0 %v2051_v24  ;;  %v2044_v32 = vpop.xlane.xlu1 %2043 }
 0xd34   : > { %v2046_v46 = vmul.f32 %v2044_v32, %v3098_v40 }
 0xd36   : > { %v2048_v49 = vsub.f32 %v2034_v43, %v2046_v46 }
 0xd38   : > { %v2050_v1 = vmul.f32 %v2048_v49, %v2048_v49 }
 0xd3a   : > { %v2054_v50 = vsel %vm769_vm15, %v2050_v1, 0.0 }
 0xd3b   : > { %2055 = vadd.xlane.f32.xlu2 %v2054_v50 }
 0xda6   : > { %v2053_v51 = vpop.xlane.xlu0 %2052 }
 0xda7   : > { %v2057_v52 = vmul.f32 %v2053_v51, %v3098_v40 }
 0xda9   : > { %v2059_v53 = vadd.f32 1e-05, %v2057_v52 }
 0xdab   : > { %2722 = vrsqrt.f32 %v2059_v53  ;;  %vm2067_vm2 = vweird.f32 %v2059_v53 }
 0xdae   : > { %v2056_v56 = vpop.xlane.xlu2 %2055 }
 0xdaf   : > { %v2058_v57 = vmul.f32 %v2056_v56, %v3098_v40 }
 0xdb1   : > { %v2723_v58 = vpop.eup %2722  ;;  %v2060_v59 = vadd.f32 1e-05, %v2058_v57 }
 0xdb2   : > { %v2062_v60 = vmul.f32 %v2723_v58, %v2059_v53  ;;  %vm2068_vm0 = vweird.f32 %v2723_v58 }
 0xdb3   : > { %2724 = vrsqrt.f32 %v2060_v59  ;;  %vm2069_vm5 = vmor %vm2067_vm2, %vm2068_vm0  ;;  %vm2077_vm7 = vweird.f32 %v2060_v59 }
 0xdb4   : > { %v2063_v63 = vmul.f32 %v2723_v58, %v2062_v60 }
 0xdb6   : > { %v2064_v62 = vmul.f32 0.5, %v2063_v63 }
 0xdb8   : > { %v2065_v3 = vsub.f32 1.5, %v2064_v62 }
 0xdb9   : > { %v2725_v4 = vpop.eup %2724 }
 0xdba   : > { %v2066_v5 = vmul.f32 %v2723_v58, %v2065_v3  ;;  %v2072_v47 = vmul.f32 %v2725_v4, %v2060_v59  ;;  %vm2078_vm6 = vweird.f32 %v2725_v4 }
 0xdbb   : > { %vm2079_vm8 = vmor %vm2077_vm7, %vm2078_vm6 }
 0xdbc   : > { %v2073_v6 = vmul.f32 %v2725_v4, %v2072_v47  ;;  %v2070_v7 = vsel %vm2069_vm5, %v2723_v58, %v2066_v5 }
 0xdbd   : > { %v2081_v11 = vmul.f32 %v2070_v7, %v2047_v23  ;;  %v2633_v7 = vld [vmem:[%s3388_s13 + $0x1] ss:$0 sm:$0xff] }
 0xdbe   : > { %v2074_v8 = vmul.f32 0.5, %v2073_v6 }
 0xdbf   : > { %v2086_v15 = vmul.f32 %v2629_v10, %v2081_v11  ;;  %v2634_v11 = vld [vmem:[%s3389_s14 + $0x1] ss:$0 sm:$0xff] }
 0xdc0   : > { %v2075_v9 = vsub.f32 1.5, %v2074_v8 }
 0xdc1   : > { %v2091_v20 = vadd.f32 %v2630_v2, %v2086_v15 }
 0xdc2   : > { %v2076_v14 = vmul.f32 %v2725_v4, %v2075_v9 }
 0xdc4   : > { %v2080_v55 = vsel %vm2079_vm8, %v2725_v4, %v2076_v14 }
 0xdc5   : > { %v2082_v16 = vmul.f32 %v2080_v55, %v2048_v49 }
 0xdc7   : > { %v2087_v18 = vmul.f32 %v2629_v10, %v2082_v16 }
 0xdc9   : > { %v2092_v22 = vadd.f32 %v2630_v2, %v2087_v18 }
 0xdcb   : > { %v2093_v26 = vpack.c.bf16 %v2092_v22, %v2091_v20 }
 0xdcd   : > { %2523 = vmatmul.msk.bf16.vlgmr.msrb.gmra.mxu1 %vm769_vm15, %v2093_v26 }
 0xe4a   : > { %v2128_v31 = vpop.f32.mrf.mxu1 }
 0xe4b   : > { %v2129_v34 = vadd.f32 %v2631_v33, %v2128_v31 }
 0xe4d   : > { %v2133_v37 = vmax.f32 %v2129_v34, 0.0 }
 0xe52   : > { %v2130_v35 = vpop.f32.mrf.mxu1 }
 0xe53   : > { %v2131_v36 = vadd.f32 %v2631_v33, %v2130_v35 }
 0xe55   : > { %v2134_v13 = vmax.f32 %v2131_v36, 0.0 }
 0xe57   : > { %v2135_v61 = vpack.c.bf16 %v2134_v13, %v2133_v37 }
 0xe59   : > { %2549 = vmatmul.msk.bf16.vlgmr.msrb.gmra.mxu2 %vm1423_vm10, %v2135_v61 }
 0xedc   : > { %v2186_v38 = vpop.f32.mrf.mxu2 }
 0xedd   : > { %v2187_v39 = vadd.f32 %v2632_v0, %v2186_v38 }
 0xedf   : > { %v2191_v42 = vadd.f32 %v2187_v39, %v2091_v20 }
 0xee1   : > { %v2197_v43 = vsel %vm769_vm15, %v2191_v42, 0.0 }
 0xee2   : > { %2198 = vadd.xlane.f32.xlu1 %v2197_v43  ;;  %v2582_v43 = vld [vmem:[%s3392_s17] sm:$0xff] }
 0xee4   : > { %v2188_v44 = vpop.f32.mrf.mxu2 }
 0xee5   : > { %v2189_v27 = vadd.f32 %v2632_v0, %v2188_v44  ;;  %v2583_v0 = vld [vmem:[%s3392_s17 + $0x8] sm:$0xff] }
 0xee6   : > { %2337 = vmatpush.bf16.msrb.mxu3 %v2583_v0 }
 0xee7   : > { %v2192_v19 = vadd.f32 %v2189_v27, %v2092_v22 }
 0xee9   : > { %v2200_v23 = vsel %vm769_vm15, %v2192_v19, 0.0 }
 0xeea   : > { %2201 = vadd.xlane.f32.xlu0 %v2200_v23  ;;  %2338 = vmatpush.bf16.msrb.mxu3 %v2582_v43 }
 0xf55   : > { %v2199_v45 = vpop.xlane.xlu1 %2198 }
 0xf56   : > { %v2203_v24 = vmul.f32 %v2199_v45, %v3098_v40 }
 0xf58   : > { %v2205_v32 = vsub.f32 %v2191_v42, %v2203_v24 }
 0xf5a   : > { %v2207_v46 = vmul.f32 %v2205_v32, %v2205_v32 }
 0xf5c   : > { %v2209_v49 = vsel %vm769_vm15, %v2207_v46, 0.0 }
 0xf5d   : > { %v2202_v1 = vpop.xlane.xlu0 %2201  ;;  %2210 = vadd.xlane.f32.xlu2 %v2209_v49 }
 0xf5e   : > { %v2204_v50 = vmul.f32 %v2202_v1, %v3098_v40 }
 0xf60   : > { %v2206_v25 = vsub.f32 %v2192_v19, %v2204_v50 }
 0xf62   : > { %v2208_v51 = vmul.f32 %v2206_v25, %v2206_v25 }
 0xf64   : > { %v2212_v52 = vsel %vm769_vm15, %v2208_v51, 0.0 }
 0xf65   : > { %2213 = vadd.xlane.f32.xlu1 %v2212_v52 }
 0xfd0   : > { %v2211_v53 = vpop.xlane.xlu2 %2210 }
 0xfd1   : > { %v2215_v54 = vmul.f32 %v2211_v53, %v3098_v40 }
 0xfd3   : > { %v2217_v56 = vadd.f32 1e-05, %v2215_v54 }
 0xfd5   : > { %2726 = vrsqrt.f32 %v2217_v56  ;;  %vm2225_vm10 = vweird.f32 %v2217_v56 }
 0xfd8   : > { %v2214_v57 = vpop.xlane.xlu1 %2213 }
 0xfd9   : > { %v2216_v58 = vmul.f32 %v2214_v57, %v3098_v40 }
 0xfdb   : > { %v2727_v59 = vpop.eup %2726  ;;  %v2218_v60 = vadd.f32 1e-05, %v2216_v58  ;;  %v2636_v58 = vld [vmem:[%s3391_s16] ss:$0 sm:$0xff] }
 0xfdc   : > { %v2220_v63 = vmul.f32 %v2727_v59, %v2217_v56  ;;  %vm2226_vm9 = vweird.f32 %v2727_v59 }
 0xfdd   : > { %2728 = vrsqrt.f32 %v2218_v60  ;;  %vm2227_vm11 = vmor %vm2225_vm10, %vm2226_vm9  ;;  %vm2235_vm13 = vweird.f32 %v2218_v60 }
 0xfde   : > { %v2221_v62 = vmul.f32 %v2727_v59, %v2220_v63 }
 0xfe0   : > { %v2222_v3 = vmul.f32 0.5, %v2221_v62 }
 0xfe2   : > { %v2223_v4 = vsub.f32 1.5, %v2222_v3 }
 0xfe3   : > { %v2729_v5 = vpop.eup %2728 }
 0xfe4   : > { %v2224_v47 = vmul.f32 %v2727_v59, %v2223_v4  ;;  %v2230_v6 = vmul.f32 %v2729_v5, %v2218_v60  ;;  %vm2236_vm12 = vweird.f32 %v2729_v5 }
 0xfe5   : > { %vm2237_vm14 = vmor %vm2235_vm13, %vm2236_vm12 }
 0xfe6   : > { %v2231_v8 = vmul.f32 %v2729_v5, %v2230_v6  ;;  %v2228_v9 = vsel %vm2227_vm11, %v2727_v59, %v2224_v47 }
 0xfe7   : > { %v2239_v10 = vmul.f32 %v2228_v9, %v2205_v32 }
 0xfe8   : > { %v2232_v14 = vmul.f32 0.5, %v2231_v8 }
 0xfe9   : > { %v2244_v55 = vmul.f32 %v2633_v7, %v2239_v10 }
 0xfea   : > { %v2233_v2 = vsub.f32 1.5, %v2232_v14 }
 0xfeb   : > { %v2249_v15 = vadd.f32 %v2634_v11, %v2244_v55 }
 0xfec   : > { %v2234_v16 = vmul.f32 %v2729_v5, %v2233_v2 }
 0xfed   : > { %v2253_v18 = vsel %vm769_vm15, %v2249_v15, 0.0 }
 0xfee   : > { %2254 = vadd.xlane.f32.xlu0 %v2253_v18  ;;  %v2238_v20 = vsel %vm2237_vm14, %v2729_v5, %v2234_v16  ;;  %v2637_v5 = vld [vmem:[%s3393_s18] ss:$0 sm:$0xff] }
 0xfef   : > { %v2240_v22 = vmul.f32 %v2238_v20, %v2206_v25 }
 0xff1   : > { %v2245_v26 = vmul.f32 %v2633_v7, %v2240_v22 }
 0xff3   : > { %v2250_v28 = vadd.f32 %v2634_v11, %v2245_v26 }
 0xff5   : > { %v2256_v29 = vsel %vm769_vm15, %v2250_v28, 0.0 }
 0xff6   : > { %2257 = vadd.xlane.f32.xlu2 %v2256_v29 }
0x1061   : > { %v2255_v21 = vpop.xlane.xlu0 %2254 }
0x1062   : > { %v2259_v30 = vmul.f32 %v2255_v21, %v3098_v40 }
0x1064   : > { %v2261_v31 = vsub.f32 %v2249_v15, %v2259_v30 }
0x1066   : > { %v2263_v33 = vmul.f32 %v2261_v31, %v2261_v31 }
0x1068   : > { %v2265_v34 = vsel %vm769_vm15, %v2263_v33, 0.0 }
0x1069   : > { %2266 = vadd.xlane.f32.xlu1 %v2265_v34  ;;  %v2258_v35 = vpop.xlane.xlu2 %2257 }
0x106a   : > { %v2260_v36 = vmul.f32 %v2258_v35, %v3098_v40 }
0x106c   : > { %v2262_v37 = vsub.f32 %v2250_v28, %v2260_v36 }
0x106e   : > { %v2264_v13 = vmul.f32 %v2262_v37, %v2262_v37 }
0x1070   : > { %v2268_v61 = vsel %vm769_vm15, %v2264_v13, 0.0 }
0x1071   : > { %2269 = vadd.xlane.f32.xlu0 %v2268_v61 }
0x10dc   : > { %v2267_v38 = vpop.xlane.xlu1 %2266 }
0x10dd   : > { %v2271_v39 = vmul.f32 %v2267_v38, %v3098_v40 }
0x10df   : > { %v2273_v42 = vadd.f32 1e-05, %v2271_v39 }
0x10e1   : > { %2730 = vrsqrt.f32 %v2273_v42  ;;  %vm2281_vm4 = vweird.f32 %v2273_v42 }
0x10e4   : > { %v2270_v44 = vpop.xlane.xlu0 %2269 }
0x10e5   : > { %v2272_v27 = vmul.f32 %v2270_v44, %v3098_v40  ;;  %v2635_v40 = vld [vmem:[%s3390_s15] ss:$0 sm:$0xff] }
0x10e7   : > { %v2731_v19 = vpop.eup %2730  ;;  %v2274_v23 = vadd.f32 1e-05, %v2272_v27 }
0x10e8   : > { %v2276_v45 = vmul.f32 %v2731_v19, %v2273_v42  ;;  %vm2282_vm3 = vweird.f32 %v2731_v19 }
0x10e9   : > { %2732 = vrsqrt.f32 %v2274_v23  ;;  %vm2283_vm0 = vmor %vm2281_vm4, %vm2282_vm3  ;;  %vm2291_vm5 = vweird.f32 %v2274_v23 }
0x10ea   : > { %v2277_v24 = vmul.f32 %v2731_v19, %v2276_v45 }
0x10ec   : > { %v2278_v32 = vmul.f32 0.5, %v2277_v24 }
0x10ee   : > { %v2279_v46 = vsub.f32 1.5, %v2278_v32 }
0x10ef   : > { %v2733_v49 = vpop.eup %2732 }
0x10f0   : > { %v2280_v1 = vmul.f32 %v2731_v19, %v2279_v46  ;;  %v2286_v50 = vmul.f32 %v2733_v49, %v2274_v23  ;;  %vm2292_vm2 = vweird.f32 %v2733_v49 }
0x10f1   : > { %vm2293_vm6 = vmor %vm2291_vm5, %vm2292_vm2 }
0x10f2   : > { %v2287_v25 = vmul.f32 %v2733_v49, %v2286_v50  ;;  %v2284_v51 = vsel %vm2283_vm0, %v2731_v19, %v2280_v1 }
0x10f3   : > { %v2295_v54 = vmul.f32 %v2284_v51, %v2261_v31 }
0x10f4   : > { %v2288_v52 = vmul.f32 0.5, %v2287_v25 }
0x10f5   : > { %v2300_v59 = vmul.f32 %v2635_v40, %v2295_v54 }
0x10f6   : > { %v2289_v53 = vsub.f32 1.5, %v2288_v52 }
0x10f7   : > { %v2305_v62 = vadd.f32 %v2636_v58, %v2300_v59 }
0x10f8   : > { %v2290_v56 = vmul.f32 %v2733_v49, %v2289_v53 }
0x10fa   : > { %v2294_v57 = vsel %vm2293_vm6, %v2733_v49, %v2290_v56 }
0x10fb   : > { %v2296_v60 = vmul.f32 %v2294_v57, %v2262_v37 }
0x10fd   : > { %v2301_v63 = vmul.f32 %v2635_v40, %v2296_v60 }
0x10ff   : > { %v2306_v3 = vadd.f32 %v2636_v58, %v2301_v63 }
0x1101   : > { %v2307_v4 = vpack.c.bf16 %v2306_v3, %v2305_v62 }
0x1103   : > { %2560 = vmatmul.msk.bf16.vlgmr.msrb.gmra.mxu3 %vm769_vm15, %v2307_v4 }
0x1186   : > { %v2340_v47 = vpop.f32.mrf.mxu3 }
0x1187   : > { %v2341_v6 = vadd.f32 %v2637_v5, %v2340_v47 }
0x1189   : > { %v2345_v7 = vmul.f32 %v2341_v6, %v2939_v48 }
0x118b   : > { %v2347_v8 = vadd.f32 %v2345_v7, %v2925_v17 }
0x118d   : > { %2349 = vst.msk [vmem:[%s619_s30] sm:$0xff] %vm841_vm1, %v2347_v8 }
0x118e   : > { %v2342_v9 = vpop.f32.mrf.mxu3 }
0x118f   : > { %v2343_v10 = vadd.f32 %v2637_v5, %v2342_v9 }
0x1191   : > { %v2346_v11 = vmul.f32 %v2343_v10, %v2936_v41 }
0x1193   : > { %v2348_v14 = vadd.f32 %v2346_v11, %v2916_v12 }
0x1195   : > { %2350 = vst.msk [vmem:[%s619_s30 + $0x8] sm:$0xff] %vm841_vm1, %v2348_v14 }
0x1196 PF: > { %s30_s0 = sadd.s32 1, %s2774_s0  }
0x1197   : > { %p27_p7 = scmp.ge.s32.totalorder %s30_s0, 4  }
0x1199   :  { %29 = sbr.rel (!%p27_p7) target bundleno = 6 (0x6), region = 143 }
0x119e   :  { %2372 = vsyncpa [#allocation3], 1 }
0x119f   :  { %2374 = vsyncpa [#allocation3 + $0x1], 1 }

</bundles_post_ra>
